<compile_context>
chip_gen: v5e
topology: v5e:2x2
jax: 0.10.0
libtpu: 0.0.40
codegen_flags: <defaults>
</compile_context>

<pallas_src>
import math

import jax
import jax.numpy as jnp
from jax.experimental import pallas as pl
from jax.experimental.pallas import tpu as pltpu


def _pick_tile_n(mod_total, dim, *, max_tile=2048,
                 weight_budget_bytes=8 * 1024 * 1024):
    """Largest multiple of 128 dividing mod_total whose double-buffered bf16
    weight tile fits the budget."""
    best, n = 128, 128
    while n <= min(mod_total, max_tile):
        if mod_total % n == 0 and 2 * (dim * n * 2) <= weight_budget_bytes:
            best = n
        n += 128
    return best


def make_dit_conditioning(w1, b1, w2, b2, wmod, bmod, *, max_period=10000.0,
                          tile_n=None, interpret=False):
    """Builds a jitted  t -> (t_emb, adaLN_mod)  closure.

    Weights stored (in_features, out_features).  All one-time prep (bf16
    weight cast, freq/phase row, bias packing, tile-size choice) happens here.
    """
    dim, hidden = w1.shape
    mod_total = wmod.shape[1]
    assert w2.shape == (hidden, dim)
    assert dim % 2 == 0, "dim must be even"
    # TODO(synk): odd frequency_embedding_size (zero-pad column) not implemented.
    assert dim % 128 == 0 and hidden % 128 == 0 and mod_total % 128 == 0, (
        "dim / hidden / mod_total assumed lane-aligned (multiples of 128)")

    half = dim // 2
    base = jnp.exp(-math.log(max_period) *
                   jnp.arange(half, dtype=jnp.float32) / half)
    freqs_full = jnp.concatenate([base, base])                       # (dim,)
    phase = jnp.concatenate([jnp.zeros((half,), jnp.float32),
                             jnp.full((half,), -0.5 * math.pi, jnp.float32)])
    # Packed (1, 3*dim + hidden) f32 row: [freqs | phase | b1 | b2].
    row = jnp.concatenate([freqs_full, phase,
                           b1.astype(jnp.float32).reshape(-1),
                           b2.astype(jnp.float32).reshape(-1)]).reshape(1, -1)
    row_len = int(row.shape[1])

    # bf16 weights stored once (halves dominant weight HBM traffic).
    w1_bf = w1.astype(jnp.bfloat16)
    w2_bf = w2.astype(jnp.bfloat16)
    wmod_bf = wmod.astype(jnp.bfloat16)
    bmod2d = bmod.astype(jnp.float32).reshape(1, mod_total)

    if tile_n is None:
        tile_n = _pick_tile_n(mod_total, dim)
    assert mod_total % tile_n == 0 and tile_n % 128 == 0
    num_tiles = mod_total // tile_n

    o_freq_end = dim
    o_phase_end = 2 * dim
    o_b1_end = 2 * dim + hidden
    o_b2_end = 3 * dim + hidden
    assert o_b2_end == row_len

    def kernel(t_ref, row_ref, w1_ref, w2_ref, wmod_ref, bmod_ref,
               temb_ref, mod_ref, c_ref):
        j = pl.program_id(0)

        @pl.when(j == 0)
        def _():
            freqs = row_ref[:, 0:o_freq_end]               # (1, dim)
            ph    = row_ref[:, o_freq_end:o_phase_end]     # (1, dim)
            b1v   = row_ref[:, o_phase_end:o_b1_end]       # (1, hidden)
            b2v   = row_ref[:, o_b1_end:o_b2_end]          # (1, dim)

            # Sinusoidal embedding as one lane-dense full-width cos:
            # emb[:, :half] = cos(t*f);  emb[:, half:] = cos(t*f - pi/2) = sin(t*f)
            emb = jnp.cos(t_ref[...] * freqs + ph)         # (B, dim) f32

            # TimestepEmbedder MLP: Linear -> SiLU -> Linear (f32 accumulation,
            # SiLU kept in f32 for v5e portability).
            h = jnp.dot(emb.astype(jnp.bfloat16), w1_ref[...],
                        preferred_element_type=jnp.float32) + b1v
            h = h * jax.nn.sigmoid(h)
            temb = jnp.dot(h.astype(jnp.bfloat16), w2_ref[...],
                           preferred_element_type=jnp.float32) + b2v
            temb_ref[...] = temb
            # Cache SiLU(temb) once (bf16) for the streamed modulation matmuls.
            c = temb * jax.nn.sigmoid(temb)
            c_ref[...] = c.astype(jnp.bfloat16)

        # Streamed fused adaLN modulation: one (B, dim) x (dim, TILE_N) matmul
        # per grid step, overlapped with the next wmod tile DMA.
        mod_ref[...] = jnp.dot(c_ref[...], wmod_ref[...],
                               preferred_element_type=jnp.float32) + bmod_ref[...]

    def conditioning(t):
        B = t.shape[0]
        t2d = t.astype(jnp.float32).reshape(B, 1)

        resident = (4 * B + 4 * row_len + 2 * dim * hidden + 2 * hidden * dim
                    + 4 * B * dim + 2 * B * dim)
        per_tile = 2 * (2 * dim * tile_n + 4 * tile_n + 4 * B * tile_n)
        vmem_limit = int(min(max(2 * (resident + per_tile), 32 * 1024 * 1024),
                             48 * 1024 * 1024))

        call = pl.pallas_call(
            kernel,
            out_shape=(jax.ShapeDtypeStruct((B, dim), jnp.float32),
                       jax.ShapeDtypeStruct((B, mod_total), jnp.float32)),
            grid_spec=pltpu.PrefetchScalarGridSpec(
                num_scalar_prefetch=0,
                grid=(num_tiles,),
                in_specs=[
                    pl.BlockSpec((B, 1),        lambda j: (0, 0)),  # t (resident)
                    pl.BlockSpec((1, row_len),  lambda j: (0, 0)),  # packed consts/biases
                    pl.BlockSpec((dim, hidden), lambda j: (0, 0)),  # w1 (resident)
                    pl.BlockSpec((hidden, dim), lambda j: (0, 0)),  # w2 (resident)
                    pl.BlockSpec((dim, tile_n), lambda j: (0, j)),  # wmod (streamed)
                    pl.BlockSpec((1, tile_n),   lambda j: (0, j)),  # bmod (streamed)
                ],
                out_specs=(
                    pl.BlockSpec((B, dim),    lambda j: (0, 0)),    # temb (written at j==0)
                    pl.BlockSpec((B, tile_n), lambda j: (0, j)),    # mod tiles
                ),
                scratch_shapes=[pltpu.VMEM((B, dim), jnp.bfloat16)],  # SiLU(temb) cache
            ),
            compiler_params=pltpu.CompilerParams(
                # The N axis streams over a scratch carry -> sequential.
                # TODO(synk): for large training-time B on v7x, add a leading
                # "parallel" B grid axis so the second TensorCore is engaged.
                dimension_semantics=("arbitrary",),
                vmem_limit_bytes=vmem_limit,
            ),
            interpret=interpret,
        )
        return call(t2d, row, w1_bf, w2_bf, wmod_bf, bmod2d)

    return jax.jit(conditioning)


def reference_forward(t, w1, b1, w2, b2, wmod, bmod, *, max_period=10000.0):
    """Pure-JAX reference matching the PyTorch module semantics (f32 math)."""
    dim = w1.shape[0]
    half = dim // 2
    freqs = jnp.exp(-math.log(max_period) *
                    jnp.arange(half, dtype=jnp.float32) / half)
    args = t.astype(jnp.float32)[:, None] * freqs[None, :]
    emb = jnp.concatenate([jnp.cos(args), jnp.sin(args)], axis=-1)
    h = emb @ w1 + b1
    h = h * jax.nn.sigmoid(h)
    temb = h @ w2 + b2
    c = temb * jax.nn.sigmoid(temb)
    mod = c @ wmod + bmod
    return temb, mod


if __name__ == "__main__":
    # Small config consistent with the module: dim=128, expansion_factor=4,
    # 2 DiT blocks' adaLN (4*dim each) + FinalLayer adaLN (2*dim) fused.
    B = 8
    dim = 128
    hidden = dim * 4
    num_layers = 2
    mod_total = num_layers * 4 * dim + 2 * dim     # 1280

    key = jax.random.PRNGKey(0)
    k_t, k_w1, k_b1, k_w2, k_b2, k_wm, k_bm = jax.random.split(key, 7)

    t = jax.random.uniform(k_t, (B,), jnp.float32, 0.0, 1000.0)
    w1 = jax.random.normal(k_w1, (dim, hidden), jnp.float32) * 0.02
    b1 = jax.random.normal(k_b1, (hidden,), jnp.float32) * 0.02
    w2 = jax.random.normal(k_w2, (hidden, dim), jnp.float32) * 0.02
    b2 = jax.random.normal(k_b2, (dim,), jnp.float32) * 0.02
    wmod = jax.random.normal(k_wm, (dim, mod_total), jnp.float32) * 0.02
    bmod = jax.random.normal(k_bm, (mod_total,), jnp.float32) * 0.02

    # One-time init: bf16 weight cast, packed constant row, tile selection.
    conditioning = make_dit_conditioning(w1, b1, w2, b2, wmod, bmod)

    temb, mod = conditioning(t)
    temb, mod = jax.block_until_ready((temb, mod))

    # Reference uses bf16-rounded weights (the kernel feeds bf16 to the MXU);
    # the loose tolerance additionally covers bf16 rounding of activations.
    q = lambda w: w.astype(jnp.bfloat16).astype(jnp.float32)
    temb_ref, mod_ref = reference_forward(t, q(w1), b1, q(w2), b2, q(wmod), bmod)

    assert temb.shape == (B, dim) and mod.shape == (B, mod_total)
    assert jnp.allclose(temb, temb_ref, atol=1e-2, rtol=1e-2), "t_emb mismatch"
    assert jnp.allclose(mod, mod_ref, atol=1e-2, rtol=1e-2), "adaLN mod mismatch"

    print("KERNEL_OK")
</pallas_src>

<mosaic_0001>
module attributes {stable_mosaic.version = 11 : i64} {
  func.func @kernel(%arg0: i32, %arg1: memref<8x1xf32, #tpu.memory_space<vmem>>, %arg2: memref<1x896xf32, #tpu.memory_space<vmem>>, %arg3: memref<128x512xbf16, #tpu.memory_space<vmem>>, %arg4: memref<512x128xbf16, #tpu.memory_space<vmem>>, %arg5: memref<128x1280xbf16, #tpu.memory_space<vmem>>, %arg6: memref<1x1280xf32, #tpu.memory_space<vmem>>, %arg7: memref<8x128xf32, #tpu.memory_space<vmem>>, %arg8: memref<8x1280xf32, #tpu.memory_space<vmem>>, %arg9: memref<8x128xbf16, #tpu.memory_space<vmem>>) attributes {dimension_semantics = [#tpu.dimension_semantics<arbitrary>], iteration_bounds = array<i64: 1>, scalar_prefetch = 0 : i64, scratch_operands = 1 : i64, tpu.core_type = #tpu.core_type<tc>, window_params = [{pipeline_mode = #tpu.pipeline_mode<synchronous>, transform_indices = @transform_0, window_bounds = array<i64: 8, 1>}, {pipeline_mode = #tpu.pipeline_mode<synchronous>, transform_indices = @transform_1, window_bounds = array<i64: 1, 896>}, {pipeline_mode = #tpu.pipeline_mode<synchronous>, transform_indices = @transform_2, window_bounds = array<i64: 128, 512>}, {pipeline_mode = #tpu.pipeline_mode<synchronous>, transform_indices = @transform_3, window_bounds = array<i64: 512, 128>}, {transform_indices = @transform_4, window_bounds = array<i64: 128, 1280>}, {transform_indices = @transform_5, window_bounds = array<i64: 1, 1280>}, {pipeline_mode = #tpu.pipeline_mode<synchronous>, transform_indices = @transform_6, window_bounds = array<i64: 8, 128>}, {transform_indices = @transform_7, window_bounds = array<i64: 8, 1280>}]} {
    %c0_i32 = arith.constant 0 : i32
    %0 = arith.cmpi eq, %arg0, %c0_i32 : i32
    %1 = arith.extui %0 : i1 to i32
    %c0_i32_0 = arith.constant 0 : i32
    %2 = arith.cmpi ne, %1, %c0_i32_0 : i32
    scf.if %2 {
      %c0_8 = arith.constant 0 : index
      %c0_9 = arith.constant 0 : index
      %10 = vector.load %arg2[%c0_8, %c0_9] : memref<1x896xf32, #tpu.memory_space<vmem>>, vector<1x128xf32>
      %c0_10 = arith.constant 0 : index
      %c128 = arith.constant 128 : index
      %11 = vector.load %arg2[%c0_10, %c128] : memref<1x896xf32, #tpu.memory_space<vmem>>, vector<1x128xf32>
      %c0_11 = arith.constant 0 : index
      %c256 = arith.constant 256 : index
      %12 = vector.load %arg2[%c0_11, %c256] : memref<1x896xf32, #tpu.memory_space<vmem>>, vector<1x512xf32>
      %c0_12 = arith.constant 0 : index
      %c768 = arith.constant 768 : index
      %13 = vector.load %arg2[%c0_12, %c768] : memref<1x896xf32, #tpu.memory_space<vmem>>, vector<1x128xf32>
      %c0_13 = arith.constant 0 : index
      %c0_14 = arith.constant 0 : index
      %14 = vector.load %arg1[%c0_13, %c0_14] : memref<8x1xf32, #tpu.memory_space<vmem>>, vector<8x1xf32>
      %15 = vector.broadcast %14 : vector<8x1xf32> to vector<8x128xf32>
      %16 = vector.broadcast %10 : vector<1x128xf32> to vector<8x128xf32>
      %17 = arith.mulf %15, %16 : vector<8x128xf32>
      %18 = vector.broadcast %11 : vector<1x128xf32> to vector<8x128xf32>
      %19 = arith.addf %17, %18 : vector<8x128xf32>
      %20 = math.cos %19 : vector<8x128xf32>
      %21 = arith.truncf %20 : vector<8x128xf32> to vector<8x128xbf16>
      %c0_15 = arith.constant 0 : index
      %c0_16 = arith.constant 0 : index
      %22 = vector.load %arg3[%c0_15, %c0_16] : memref<128x512xbf16, #tpu.memory_space<vmem>>, vector<128x512xbf16>
      %cst_17 = arith.constant dense<0.000000e+00> : vector<8x512xf32>
      %23 = tpu.matmul %21, %22, %cst_17 {dimension_numbers = #tpu.dot_dimension_numbers<[1], [0], [0], [1], [0, 0, 1, 1], [], []>} : vector<8x128xbf16>, vector<128x512xbf16>, vector<8x512xf32> -> vector<8x512xf32>
      %24 = vector.broadcast %12 : vector<1x512xf32> to vector<8x512xf32>
      %25 = arith.addf %23, %24 : vector<8x512xf32>
      %26 = arith.negf %25 : vector<8x512xf32>
      %27 = math.exp %26 : vector<8x512xf32>
      %cst_18 = arith.constant 1.000000e+00 : f32
      %28 = vector.broadcast %cst_18 : f32 to vector<8x512xf32>
      %29 = arith.addf %28, %27 : vector<8x512xf32>
      %30 = arith.divf %28, %29 : vector<8x512xf32>
      %31 = arith.mulf %25, %30 : vector<8x512xf32>
      %32 = arith.truncf %31 : vector<8x512xf32> to vector<8x512xbf16>
      %c0_19 = arith.constant 0 : index
      %c0_20 = arith.constant 0 : index
      %33 = vector.load %arg4[%c0_19, %c0_20] : memref<512x128xbf16, #tpu.memory_space<vmem>>, vector<512x128xbf16>
      %cst_21 = arith.constant dense<0.000000e+00> : vector<8x128xf32>
      %34 = tpu.matmul %32, %33, %cst_21 {dimension_numbers = #tpu.dot_dimension_numbers<[1], [0], [0], [1], [0, 0, 1, 1], [], []>} : vector<8x512xbf16>, vector<512x128xbf16>, vector<8x128xf32> -> vector<8x128xf32>
      %35 = vector.broadcast %13 : vector<1x128xf32> to vector<8x128xf32>
      %36 = arith.addf %34, %35 : vector<8x128xf32>
      %c0_22 = arith.constant 0 : index
      %c0_23 = arith.constant 0 : index
      %37 = vector.load %arg7[%c0_22, %c0_23] : memref<8x128xf32, #tpu.memory_space<vmem>>, vector<8x128xf32>
      tpu.vector_store %arg7[%c0_22, %c0_23], %36 {strides = array<i32>} : memref<8x128xf32, #tpu.memory_space<vmem>>, vector<8x128xf32>,
      %38 = arith.negf %36 : vector<8x128xf32>
      %39 = math.exp %38 : vector<8x128xf32>
      %cst_24 = arith.constant 1.000000e+00 : f32
      %40 = vector.broadcast %cst_24 : f32 to vector<8x128xf32>
      %41 = arith.addf %40, %39 : vector<8x128xf32>
      %42 = arith.divf %40, %41 : vector<8x128xf32>
      %43 = arith.mulf %36, %42 : vector<8x128xf32>
      %44 = arith.truncf %43 : vector<8x128xf32> to vector<8x128xbf16>
      %c0_25 = arith.constant 0 : index
      %c0_26 = arith.constant 0 : index
      %45 = vector.load %arg9[%c0_25, %c0_26] : memref<8x128xbf16, #tpu.memory_space<vmem>>, vector<8x128xbf16>
      tpu.vector_store %arg9[%c0_25, %c0_26], %44 {strides = array<i32>} : memref<8x128xbf16, #tpu.memory_space<vmem>>, vector<8x128xbf16>,
    } else {
    }
    %c0 = arith.constant 0 : index
    %c0_1 = arith.constant 0 : index
    %3 = vector.load %arg9[%c0, %c0_1] : memref<8x128xbf16, #tpu.memory_space<vmem>>, vector<8x128xbf16>
    %c0_2 = arith.constant 0 : index
    %c0_3 = arith.constant 0 : index
    %4 = vector.load %arg5[%c0_2, %c0_3] : memref<128x1280xbf16, #tpu.memory_space<vmem>>, vector<128x1280xbf16>
    %cst = arith.constant dense<0.000000e+00> : vector<8x1280xf32>
    %5 = tpu.matmul %3, %4, %cst {dimension_numbers = #tpu.dot_dimension_numbers<[1], [0], [0], [1], [0, 0, 1, 1], [], []>} : vector<8x128xbf16>, vector<128x1280xbf16>, vector<8x1280xf32> -> vector<8x1280xf32>
    %c0_4 = arith.constant 0 : index
    %c0_5 = arith.constant 0 : index
    %6 = vector.load %arg6[%c0_4, %c0_5] : memref<1x1280xf32, #tpu.memory_space<vmem>>, vector<1x1280xf32>
    %7 = vector.broadcast %6 : vector<1x1280xf32> to vector<8x1280xf32>
    %8 = arith.addf %5, %7 : vector<8x1280xf32>
    %c0_6 = arith.constant 0 : index
    %c0_7 = arith.constant 0 : index
    %9 = vector.load %arg8[%c0_6, %c0_7] : memref<8x1280xf32, #tpu.memory_space<vmem>>, vector<8x1280xf32>
    tpu.vector_store %arg8[%c0_6, %c0_7], %8 {strides = array<i32>} : memref<8x1280xf32, #tpu.memory_space<vmem>>, vector<8x1280xf32>,
    return
  }
  func.func @transform_0(%arg0: i32) -> (i32, i32) {
    %c0_i32 = arith.constant 0 : i32
    %c0_i32_0 = arith.constant 0 : i32
    %c0_i32_1 = arith.constant 0 : i32
    return %c0_i32, %c0_i32_0 : i32, i32
  }
  func.func @transform_1(%arg0: i32) -> (i32, i32) {
    %c0_i32 = arith.constant 0 : i32
    %c0_i32_0 = arith.constant 0 : i32
    %c0_i32_1 = arith.constant 0 : i32
    return %c0_i32, %c0_i32_0 : i32, i32
  }
  func.func @transform_2(%arg0: i32) -> (i32, i32) {
    %c0_i32 = arith.constant 0 : i32
    %c0_i32_0 = arith.constant 0 : i32
    %c0_i32_1 = arith.constant 0 : i32
    return %c0_i32, %c0_i32_0 : i32, i32
  }
  func.func @transform_3(%arg0: i32) -> (i32, i32) {
    %c0_i32 = arith.constant 0 : i32
    %c0_i32_0 = arith.constant 0 : i32
    %c0_i32_1 = arith.constant 0 : i32
    return %c0_i32, %c0_i32_0 : i32, i32
  }
  func.func @transform_4(%arg0: i32) -> (i32, i32) {
    %c0_i32 = arith.constant 0 : i32
    %c0_i32_0 = arith.constant 0 : i32
    return %c0_i32, %arg0 : i32, i32
  }
  func.func @transform_5(%arg0: i32) -> (i32, i32) {
    %c0_i32 = arith.constant 0 : i32
    %c0_i32_0 = arith.constant 0 : i32
    return %c0_i32, %arg0 : i32, i32
  }
  func.func @transform_6(%arg0: i32) -> (i32, i32) {
    %c0_i32 = arith.constant 0 : i32
    %c0_i32_0 = arith.constant 0 : i32
    %c0_i32_1 = arith.constant 0 : i32
    return %c0_i32, %c0_i32_0 : i32, i32
  }
  func.func @transform_7(%arg0: i32) -> (i32, i32) {
    %c0_i32 = arith.constant 0 : i32
    %c0_i32_0 = arith.constant 0 : i32
    return %c0_i32, %arg0 : i32, i32
  }
}

</mosaic_0001>

<bundles_post_ra>
// kernel: conditioning.1
= control target key start
LH: loop header
LB: loop body
LE: loop exit
PB: predicated region body
PF: predicated region fallthrough
CT: control target
= control target key end

     0   :  { %13 = vsyncpa [#allocation4], 0  ;;  %s2745_s0 = inlined_call_operand.vmem [shape: f32[8,1], index: 0, kind: input, shape index: {}]   ;;  %s2746_s1 = inlined_call_operand.hbm [shape: f32[1,896], index: 1, kind: input, shape index: {}]   ;;  %s2747_s2 = inlined_call_operand.hbm [shape: bf16[128,512], index: 2, kind: input, shape index: {}]   ;;  %s2748_s3 = inlined_call_operand.hbm [shape: bf16[512,128], index: 3, kind: input, shape index: {}]   ;;  %s2749_s4 = inlined_call_operand.hbm [shape: bf16[128,1280], index: 4, kind: input, shape index: {}]   ;;  %s2750_s5 = inlined_call_operand.vmem [shape: f32[1,1280], index: 5, kind: input, shape index: {}]   ;;  %s2751_s6 = inlined_call_operand.hbm [shape: f32[8,128], index: 6, kind: output, shape index: {0}]   ;;  %s2752_s7 = inlined_call_operand.hbm [shape: f32[8,1280], index: 7, kind: output, shape index: {1}]  }
   0x1   :  { %14 = vsyncpa [#allocation7], 0 }
   0x2   :  { %15 = vsyncpa [#allocation10], 0 }
   0x3   :  { %16 = vsyncpa [#allocation5], 0  ;;  %s35_s26 = sshll.u32 %s2747_s2, 4  ;;  %s36_s26 = int_to_ptr.hbm [resolvable:$true] %s35_s26 }
   0x4   :  { %17 = vsyncpa [#allocation13], 0  ;;  %s2541_s27 = smov [#allocation6]   ;;  %s25_s8 = sshll.u32 %s2746_s1, 4  ;;  %s26_s8 = int_to_ptr.hbm [resolvable:$true] %s25_s8 }
   0x5   :  { %s37_s28 = sshll.u32 %s2541_s27, 4  ;;  %s2542_s9 = smov 256   ;;  %s38_s28 = int_to_ptr.vmem [resolvable:$true] %s37_s28 }
   0x6   :  { %s2543_s10 = smov 16   ;;  %s2544_s11 = smov [#allocation3]  }
   0x7   :  { %43 = dma.hbm_to_vmem [thread:$0]  %s36_s26, 4096, %s38_s28, [#allocation7], %s2542_s9, %s2542_s9, %s2543_s10  }
   0x8   :  { %s27_s12 = sshll.u32 %s2544_s11, 4  ;;  %s48_s15 = sshll.u32 %s2748_s3, 4  ;;  %s28_s12 = int_to_ptr.vmem [resolvable:$true] %s27_s12  ;;  %s49_s15 = int_to_ptr.hbm [resolvable:$true] %s48_s15 }
   0x9   :  { %30 = dma.hbm_to_vmem [thread:$0]  %s26_s8, 112, %s28_s12, [#allocation4]  }
   0xa   :  { %s2545_s2 = smov [#allocation8]   ;;  %s61_s1 = sshll.u32 %s2749_s4, 4  ;;  %s62_s1 = int_to_ptr.hbm [resolvable:$true] %s61_s1 }
   0xb   :  { %s50_s16 = sshll.u32 %s2545_s2, 4  ;;  %s2546_s19 = smov 64   ;;  %s51_s16 = int_to_ptr.vmem [resolvable:$true] %s50_s16 }
   0xc   :  { %s2547_s20 = smov 4   ;;  %s2548_s21 = smov [#allocation9]  }
   0xd   :  { %56 = dma.hbm_to_vmem [thread:$0]  %s49_s15, 4096, %s51_s16, [#allocation7], %s2546_s19, %s2546_s19, %s2547_s20  }
   0xe   :  { %s63_s22 = sshll.u32 %s2548_s21, 4  ;;  %s2549_s23 = smov 640   ;;  %s64_s22 = int_to_ptr.vmem [resolvable:$true] %s63_s22 }
   0xf   :  { %s2550_s24 = smov 40  }
  0x10   :  { %69 = dma.hbm_to_vmem [thread:$0]  %s62_s1, 10240, %s64_s22, [#allocation10], %s2549_s23, %s2549_s23, %s2550_s24  }
  0x11   :  { %2531 = dma.done.wait [#allocation4], 112  }
  0x12   :  { %2532 = vsyncadd [#allocation4], 4294967184 }
  0x13   :  { %2533 = dma.done.wait [#allocation7], 8192  }
  0x14   :  { %2534 = vsyncadd [#allocation7], 4294959104 }
  0x15   :  { %2535 = dma.done.wait [#allocation10], 10240  }
  0x16   :  { %2536 = vsyncadd [#allocation10], 4294957056  ;;  %v2551_v0 = vmov 0   ;;  %v96_v1 = vld [vmem:[%s2745_s0] sm:$0xff]  ;;  %v2552_v18 = vmov 683565275  }
  0x17   :  { %2363 = vset.pattern.permute.xlu0 %v2551_v0  ;;  %v2364_v2 = vld [vmem:[#allocation3] ss:$0 sm:$0xff]  ;;  %v2365_v3 = vld [vmem:[#allocation3 + $0x1] ss:$0 sm:$0xff]  ;;  %v2553_v20 = vmov 2475754826  }
  0x18   :  { %99 = vperm.xlu0 %2363, %v96_v1   ;;  %v2554_v23 = vmov 2131351028   ;;  %v2555_v26 = vmov 2102212464   ;;  %v2556_v29 = vmov 920167782  }
  0x19   :  { %v2557_v32 = vmov 1326507024   ;;  %s1588_s26 = sshll.u32 %s2751_s6, 4  ;;  %s2558_s27 = smov [#allocation11]   ;;  %s1589_s26 = int_to_ptr.hbm [resolvable:$true] %s1588_s26 }
  0x1a   :  { %s1586_s28 = sshll.u32 %s2558_s27, 4  ;;  %s2559_s9 = smov [#allocation12]   ;;  %s1587_s28 = int_to_ptr.vmem [resolvable:$true] %s1586_s28 }
  0x1b   :  { %s1597_s10 = sshll.u32 %s2559_s9, 4  ;;  %s1599_s13 = sshll.u32 %s2752_s7, 4  ;;  %s1598_s10 = int_to_ptr.vmem [resolvable:$true] %s1597_s10  ;;  %s1600_s13 = int_to_ptr.hbm [resolvable:$true] %s1599_s13 }
  0x8a   :  { %v100_v4 = vpop.permute.xlu0 %99 }
  0x8b   :  { %v105_v5 = vmul.f32 %v2364_v2, %v100_v4 }
  0x8d   :  { %v2616_v6 = vadd.f32 %v2365_v3, %v105_v5 }
  0x8f   :  { %v113_v7 = vand.u32 2139095040, %v2616_v6  ;;  %v110_v10 = vand.u32 2147483647, %v2616_v6  ;;  %vm112_vm12 = vcmp.lt.s32.totalorder %v2616_v6, 0 }
  0x91   :  { %v114_v8 = vshrl.u32 %v113_v7, 23  ;;  %v117_v12 = vand.u32 8388607, %v110_v10  ;;  %vm2681_vm13 = vcmp.le.f32.partialorder %v110_v10, 0.7853982 }
  0x93   :  { %v1616_v9 = vadd.s32 4294967169, %v114_v8  ;;  %v118_v16 = vor.u32 8388608, %v117_v12 }
  0x95   :  { %v120_v11 = vadd.s32 1, %v1616_v9  ;;  %v2625_v39 = vshll.u32 %v118_v16, 8 }
  0x97   :  { %vm121_vm0 = vcmp.gt.s32.totalorder %v120_v11, 0  ;;  %v159_v48 = vand.u32 65535, %v2625_v39  ;;  %v160_v49 = vshrl.u32 %v2625_v39, 16 }
  0x98   :  { %v122_v13 = vsel %vm121_vm0, %v120_v11, 0 }
  0x99   :  { %v124_v14 = vand.u32 31, %v122_v13  ;;  %v2622_v17 = vshrl.u32 %v122_v13, 5 }
  0x9b   :  { %v125_v15 = vsub.s32 32, %v124_v14  ;;  %v127_v19 = vshll.u32 %v2552_v18, %v124_v14  ;;  %v130_v21 = vshll.u32 %v2553_v20, %v124_v14  ;;  %v133_v25 = vshll.u32 %v2554_v23, %v124_v14 }
  0x9c   :  { %v136_v28 = vshll.u32 %v2555_v26, %v124_v14  ;;  %v139_v31 = vshll.u32 %v2556_v29, %v124_v14  ;;  %vm142_vm1 = vcmp.lt.s32.totalorder %v2622_v17, 1  ;;  %vm145_vm2 = vcmp.lt.s32.totalorder %v2622_v17, 4 }
  0x9d   :  { %v128_v22 = vshrl.u32 %v2553_v20, %v125_v15  ;;  %v131_v24 = vshrl.u32 %v2554_v23, %v125_v15  ;;  %v134_v27 = vshrl.u32 %v2555_v26, %v125_v15  ;;  %v137_v30 = vshrl.u32 %v2556_v29, %v125_v15  ;;  %v1733_v26 = vld [vmem:[#allocation6 + $0xe0] sm:$0xf] }
  0x9e   :  { %v140_v33 = vshrl.u32 %v2557_v32, %v125_v15  ;;  %vm144_vm3 = vcmp.lt.s32.totalorder %v2622_v17, 3  ;;  %vm143_vm4 = vcmp.lt.s32.totalorder %v2622_v17, 2  ;;  %v126_v7 = vshrl.u32 %v2552_v18, %v125_v15  ;;  %v1741_v32 = vld [vmem:[#allocation6 + $0xe8] sm:$0xf] }
  0x9f   :  { %v129_v34 = vor.u32 %v128_v22, %v127_v19  ;;  %v132_v35 = vor.u32 %v131_v24, %v130_v21  ;;  %v135_v36 = vor.u32 %v134_v27, %v133_v25  ;;  %v138_v37 = vor.u32 %v137_v30, %v136_v28  ;;  %v2230_v27 = vld [vmem:[#allocation6 + $0xec] sm:$0xf0]  ;;  %v2228_v28 = vld [vmem:[#allocation6 + $0xe4] sm:$0xf] }
  0xa0   :  { %v141_v38 = vor.u32 %v140_v33, %v139_v31  ;;  %v1735_v31 = vld [vmem:[#allocation6 + $0xf0] sm:$0xf0]  ;;  %v2231_v33 = vld [vmem:[#allocation6 + $0xf4] sm:$0xf0] }
  0xa1   :  { %v150_v40 = vsel %vm142_vm1, %v129_v34, %v132_v35  ;;  %v154_v41 = vsel %vm142_vm1, %v132_v35, %v135_v36  ;;  %v151_v42 = vsel %vm145_vm2, %v138_v37, 920167782  ;;  %v147_v11 = vsel %vm145_vm2, %v135_v36, 2102212464 }
  0xa2   :  { %v155_v43 = vsel %vm145_vm2, %v141_v38, 1326507024  ;;  %v152_v44 = vsel %vm144_vm3, %v135_v36, %v151_v42  ;;  %v146_v20 = vsel %vm142_vm1, %v126_v7, %v129_v34  ;;  %v148_v18 = vsel %vm144_vm3, %v132_v35, %v147_v11  ;;  %v2229_v38 = vld [vmem:[#allocation6 + $0xec] sm:$0xf] }
  0xa3   :  { %v156_v45 = vsel %vm144_vm3, %v138_v37, %v155_v43  ;;  %v153_v46 = vsel %vm143_vm4, %v150_v40, %v152_v44  ;;  %v149_v34 = vsel %vm143_vm4, %v146_v20, %v148_v18  ;;  %v1738_v35 = vor.u32 %v2228_v28, %v1735_v31  ;;  %v1743_v40 = vld [vmem:[#allocation6 + $0xf8] sm:$0xf0]  ;;  %v1717_v43 = vld [vmem:[#allocation6 + $0xc0] sm:$0xf]  ;;  %v2226_v44 = vld [vmem:[#allocation6 + $0xcc] sm:$0xf0] }
  0xa4   :  { %v157_v47 = vsel %vm143_vm4, %v154_v41, %v156_v45  ;;  %v183_v52 = vand.u32 65535, %v153_v46  ;;  %v184_v53 = vshrl.u32 %v153_v46, 16  ;;  %v1742_v37 = vor.u32 %v2231_v33, %v1741_v32  ;;  %v2224_v46 = vld [vmem:[#allocation6 + $0xc4] sm:$0xf]  ;;  %v2219_v20 = vld [vmem:[#allocation6 + $0x94] sm:$0xf0] }
  0xa5   :  { %v161_v50 = vand.u32 65535, %v157_v47  ;;  %v162_v51 = vshrl.u32 %v157_v47, 16  ;;  %v1746_v41 = vor.u32 %v2229_v38, %v1743_v40  ;;  %479 = vmatpush.bf16.msra.mxu1 %v1738_v35  ;;  %v203_v45 = vmul.u32 %v2625_v39, %v149_v34  ;;  %v1719_v47 = vld [vmem:[#allocation6 + $0xd0] sm:$0xf0]  ;;  %v1695_v18 = vld [vmem:[#allocation6 + $0x98] sm:$0xf0] }
  0xa6   :  { %v186_v56 = vmul.u32 %v184_v53, %v159_v48  ;;  %v187_v57 = vmul.u32 %v183_v52, %v160_v49  ;;  %v185_v61 = vmul.u32 %v183_v52, %v159_v48  ;;  %v188_v2 = vmul.u32 %v184_v53, %v160_v49  ;;  %492 = vmatpush.bf16.msra.mxu2 %v1742_v37  ;;  %v2225_v52 = vld [vmem:[#allocation6 + $0xcc] sm:$0xf]  ;;  %v1727_v53 = vld [vmem:[#allocation6 + $0xd8] sm:$0xf0]  ;;  %v1671_v28 = vld [vmem:[#allocation6 + $0x70] sm:$0xf0] }
  0xa7   :  { %v164_v54 = vmul.u32 %v162_v51, %v159_v48  ;;  %v165_v55 = vmul.u32 %v161_v50, %v160_v49  ;;  %v163_v58 = vmul.u32 %v161_v50, %v159_v48  ;;  %v166_v60 = vmul.u32 %v162_v51, %v160_v49  ;;  %505 = vmatpush.bf16.msra.mxu3 %v1746_v41  ;;  %v1725_v48 = vld [vmem:[#allocation6 + $0xc8] sm:$0xf]  ;;  %v2227_v51 = vld [vmem:[#allocation6 + $0xd4] sm:$0xf0]  ;;  %v2213_v33 = vld [vmem:[#allocation6 + $0x6c] sm:$0xf] }
  0xa8   :  { %v189_v62 = vshll.u32 %v186_v56, 16  ;;  %v191_v4 = vshll.u32 %v187_v57, 16  ;;  %v190_v21 = vshrl.u32 %v186_v56, 16  ;;  %v192_v24 = vshrl.u32 %v187_v57, 16  ;;  %v1701_v57 = vld [vmem:[#allocation6 + $0xa0] sm:$0xf] }
  0xa9   :  { %v167_v59 = vshll.u32 %v164_v54, 16  ;;  %v169_v63 = vshll.u32 %v165_v55, 16  ;;  %v168_v14 = vshrl.u32 %v164_v54, 16  ;;  %v170_v22 = vshrl.u32 %v165_v55, 16  ;;  %v2215_v32 = vld [vmem:[#allocation6 + $0x74] sm:$0xf0] }
  0xaa   :  { %vm193_vm6 = vc.u32 %v185_v61, %v189_v62  ;;  %v195_v5 = vadd.s32 %v189_v62, %v185_v61  ;;  %v1718_v17 = vor.u32 %v2226_v44, %v1717_v43  ;;  %v1722_v50 = vor.u32 %v2224_v46, %v1719_v47  ;;  %v1703_v61 = vld [vmem:[#allocation6 + $0xb0] sm:$0xf0]  ;;  %v1709_v62 = vld [vmem:[#allocation6 + $0xa8] sm:$0xf]  ;;  %v1679_v34 = vld [vmem:[#allocation6 + $0x78] sm:$0xf0] }
  0xab   :  { %vm171_vm5 = vc.u32 %v163_v58, %v167_v59  ;;  %v173_v1 = vadd.s32 %v167_v59, %v163_v58  ;;  %v194_v9 = vsel %vm193_vm6, 1, %v2551_v0  ;;  %v1726_v55 = vor.u32 %v2227_v51, %v1725_v48  ;;  %v2222_v58 = vld [vmem:[#allocation6 + $0xac] sm:$0xf0]  ;;  %v2220_v59 = vld [vmem:[#allocation6 + $0xa4] sm:$0xf] }
  0xac   :  { %v172_v3 = vsel %vm171_vm5, 1, %v2551_v0  ;;  %v196_v13 = vadd.s32 %v194_v9, %v188_v2  ;;  %vm197_vm8 = vc.u32 %v195_v5, %v191_v4  ;;  %v2660_v30 = vadd.s32 %v195_v5, %v191_v4  ;;  %480 = vmatpush.bf16.msra.mxu1 %v1722_v50  ;;  %v2221_v2 = vld [vmem:[#allocation6 + $0xac] sm:$0xf]  ;;  %v2218_v9 = vld [vmem:[#allocation6 + $0x8c] sm:$0xf0] }
  0xad   :  { %v174_v8 = vadd.s32 %v172_v3, %v166_v60  ;;  %vm175_vm7 = vc.u32 %v173_v1, %v169_v63  ;;  %v198_v19 = vsel %vm197_vm8, 1, %v2551_v0  ;;  %v1730_v56 = vor.u32 %v2225_v52, %v1727_v53  ;;  %493 = vmatpush.bf16.msra.mxu2 %v1726_v55  ;;  %v2223_v1 = vld [vmem:[#allocation6 + $0xb4] sm:$0xf0]  ;;  %v1711_v3 = vld [vmem:[#allocation6 + $0xb8] sm:$0xf0] }
  0xae   :  { %v176_v12 = vsel %vm175_vm7, 1, %v2551_v0  ;;  %v200_v15 = vadd.s32 %v198_v19, %v196_v13  ;;  %v1734_v0 = vor.u32 %v2230_v27, %v1733_v26  ;;  %v1702_v39 = vor.u32 %v2222_v58, %v1701_v57  ;;  %v1687_v13 = vld [vmem:[#allocation6 + $0x90] sm:$0xf0]  ;;  %v2212_v27 = vld [vmem:[#allocation6 + $0x64] sm:$0xf] }
  0xaf   :  { %v178_v16 = vadd.s32 %v176_v12, %v174_v8  ;;  %506 = vmatpush.bf16.msra.mxu3 %v1730_v56  ;;  %v1706_v63 = vor.u32 %v2220_v59, %v1703_v61  ;;  %v1710_v5 = vor.u32 %v2223_v1, %v1709_v62  ;;  %v1714_v7 = vor.u32 %v2221_v2, %v1711_v3  ;;  %v1685_v8 = vld [vmem:[#allocation6 + $0x80] sm:$0xf]  ;;  %v2216_v12 = vld [vmem:[#allocation6 + $0x84] sm:$0xf]  ;;  %v2210_v40 = vld [vmem:[#allocation6 + $0x4c] sm:$0xf0] }
  0xb0   :  { %v201_v25 = vadd.s32 %v200_v15, %v190_v21  ;;  %466 = vmatpush.bf16.msra.mxu0 %v1734_v0  ;;  %v1686_v11 = vor.u32 %v2218_v9, %v1685_v8  ;;  %v1690_v19 = vor.u32 %v2216_v12, %v1687_v13  ;;  %v2217_v21 = vld [vmem:[#allocation6 + $0x8c] sm:$0xf]  ;;  %v1677_v0 = vld [vmem:[#allocation6 + $0x68] sm:$0xf]  ;;  %v1674_v31 = vor.u32 %v2212_v27, %v1671_v28  ;;  %v1653_v38 = vld [vmem:[#allocation6 + $0x40] sm:$0xf] }
  0xb1   :  { %v179_v23 = vadd.s32 %v178_v16, %v168_v14  ;;  %481 = vmatpush.bf16.msra.mxu1 %v1706_v63  ;;  %v1693_v14 = vld [vmem:[#allocation6 + $0x88] sm:$0xf]  ;;  %494 = vmatpush.bf16.msra.mxu2 %v1710_v5  ;;  %v1678_v35 = vor.u32 %v2215_v32, %v1677_v0  ;;  %v1682_v37 = vor.u32 %v2213_v33, %v1679_v34  ;;  %v2208_v41 = vld [vmem:[#allocation6 + $0x44] sm:$0xf]  ;;  %v2209_v46 = vld [vmem:[#allocation6 + $0x4c] sm:$0xf]  ;;  %vm253_vm1 = vweird.f32 %v2616_v6 }
  0xb2   :  { %v202_v36 = vadd.s32 %v201_v25, %v192_v24  ;;  %v1694_v15 = vor.u32 %v2219_v20, %v1693_v14  ;;  %v1698_v25 = vor.u32 %v2217_v21, %v1695_v18  ;;  %v1661_v43 = vld [vmem:[#allocation6 + $0x48] sm:$0xf]  ;;  %v1663_v47 = vld [vmem:[#allocation6 + $0x58] sm:$0xf0]  ;;  %v1637_v50 = vld [vmem:[#allocation6 + $0x20] sm:$0xf] }
  0xb3   :  { %v2658_v29 = vadd.s32 %v179_v23, %v170_v22  ;;  %507 = vmatpush.bf16.msra.mxu3 %v1714_v7  ;;  %v1669_v22 = vld [vmem:[#allocation6 + $0x60] sm:$0xf]  ;;  %v2214_v23 = vld [vmem:[#allocation6 + $0x6c] sm:$0xf0]  ;;  %v2204_v52 = vld [vmem:[#allocation6 + $0x24] sm:$0xf] }
  0xb4   :  { %v206_v42 = vadd.s32 1, %v202_v36  ;;  %467 = vmatpush.bf16.msra.mxu0 %v1718_v17  ;;  %v1670_v26 = vor.u32 %v2214_v23, %v1669_v22  ;;  %v2211_v17 = vld [vmem:[#allocation6 + $0x54] sm:$0xf0]  ;;  %v2206_v51 = vld [vmem:[#allocation6 + $0x2c] sm:$0xf0] }
  0xb5   :  { %vm205_vm9 = vc.u32 %v2658_v29, %v2660_v30  ;;  %482 = vmatpush.bf16.msra.mxu1 %v1690_v19  ;;  %495 = vmatpush.bf16.msra.mxu2 %v1694_v15  ;;  %v1662_v53 = vor.u32 %v2211_v17, %v1661_v43  ;;  %v1639_v55 = vld [vmem:[#allocation6 + $0x30] sm:$0xf0]  ;;  %v1645_v56 = vld [vmem:[#allocation6 + $0x28] sm:$0xf]  ;;  %v2207_v57 = vld [vmem:[#allocation6 + $0x34] sm:$0xf0] }
  0xb6   :  { %v207_v49 = vsel %vm205_vm9, %v206_v42, %v202_v36  ;;  %v1655_v42 = vld [vmem:[#allocation6 + $0x50] sm:$0xf0]  ;;  %v2205_v59 = vld [vmem:[#allocation6 + $0x2c] sm:$0xf]  ;;  %v1621_v61 = vld [vmem:[#allocation6] sm:$0xf]  ;;  %v1642_v63 = vor.u32 %v2204_v52, %v1639_v55  ;;  %v1646_v5 = vor.u32 %v2207_v57, %v1645_v56 }
  0xb7   :  { %v208_v54 = vadd.s32 %v207_v49, %v203_v45  ;;  %508 = vmatpush.bf16.msra.mxu3 %v1698_v25  ;;  %v1654_v45 = vor.u32 %v2210_v40, %v1653_v38  ;;  %v1658_v49 = vor.u32 %v2208_v41, %v1655_v42  ;;  %v2202_v62 = vld [vmem:[#allocation6 + $0xc] sm:$0xf0]  ;;  %v2200_v1 = vld [vmem:[#allocation6 + $0x4] sm:$0xf]  ;;  %v1623_v2 = vld [vmem:[#allocation6 + $0x10] sm:$0xf0] }
  0xb8   :  { %468 = vmatpush.bf16.msra.mxu0 %v1702_v39  ;;  %v1638_v39 = vor.u32 %v2206_v51, %v1637_v50  ;;  %v1629_v8 = vld [vmem:[#allocation6 + $0x8] sm:$0xf]  ;;  %v2203_v9 = vld [vmem:[#allocation6 + $0x14] sm:$0xf0]  ;;  %v2201_v14 = vld [vmem:[#allocation6 + $0xc] sm:$0xf]  ;;  %v1622_v19 = vor.u32 %v2202_v62, %v1621_v61  ;;  %v1626_v18 = vor.u32 %v2200_v1, %v1623_v2 }
  0xb9   :  { %v209_v60 = vadd.s32 536870912, %v208_v54  ;;  %483 = vmatpush.bf16.msra.mxu1 %v1674_v31  ;;  %496 = vmatpush.bf16.msra.mxu2 %v1678_v35  ;;  %v1630_v22 = vor.u32 %v2203_v9, %v1629_v8  ;;  %v2239_v56 = vld [vmem:[#allocation8 + $0x38] sm:$0xff]  ;;  %v2245_v61 = vld [vmem:[#allocation8 + $0x68] sm:$0xff]  ;;  %v2254_v62 = vld [vmem:[#allocation8 + $0xb0] sm:$0xff] }
  0xba   :  { %v2247_v57 = vld [vmem:[#allocation8 + $0x78] sm:$0xff]  ;;  %v2236_v1 = vld [vmem:[#allocation8 + $0x20] sm:$0xff] }
  0xbb   :  { %v2667_v4 = vshrl.u32 %v209_v60, 30  ;;  %509 = vmatpush.bf16.msra.mxu3 %v1682_v37  ;;  %v1647_v60 = vld [vmem:[#allocation6 + $0x38] sm:$0xf0]  ;;  %v2244_v2 = vld [vmem:[#allocation8 + $0x60] sm:$0xff] }
  0xbc   :  { %469 = vmatpush.bf16.msra.mxu0 %v1686_v11  ;;  %v1650_v7 = vor.u32 %v2205_v59, %v1647_v60  ;;  %v204_v11 = vadd.s32 %v2660_v30, %v2658_v29  ;;  %v2246_v59 = vld [vmem:[#allocation8 + $0x70] sm:$0xff]  ;;  %v2255_v60 = vld [vmem:[#allocation8 + $0xb8] sm:$0xff] }
  0xbd   :  { %v211_v16 = vshll.u32 %v2667_v4, 30  ;;  %484 = vmatpush.bf16.msra.mxu1 %v1658_v49  ;;  %497 = vmatpush.bf16.msra.mxu2 %v1662_v53  ;;  %v234_v35 = vsub.s32 4, %v2667_v4  ;;  %v2235_v8 = vld [vmem:[#allocation8 + $0x18] sm:$0xff] }
  0xbe   :  { %v2243_v9 = vld [vmem:[#allocation8 + $0x58] sm:$0xff] }
  0xbf   :  { %v2670_v24 = vsub.s32 %v208_v54, %v211_v16  ;;  %v1666_v54 = vor.u32 %v2209_v46, %v1663_v47  ;;  %v1631_v16 = vld [vmem:[#allocation6 + $0x18] sm:$0xf0]  ;;  %v235_v42 = vsel %vm112_vm12, %v234_v35, %v2667_v4 }
  0xc0   :  { %470 = vmatpush.bf16.msra.mxu0 %v1670_v26  ;;  %v1634_v23 = vor.u32 %v2201_v14, %v1631_v16  ;;  %v2234_v16 = vld [vmem:[#allocation8 + $0x10] sm:$0xff] }
  0xc1   :  { %vm213_vm10 = vcmp.lt.s32.totalorder %v2670_v24, 0  ;;  %v214_v36 = vsub.s32 0, %v2670_v24  ;;  %510 = vmatpush.bf16.msra.mxu3 %v1666_v54  ;;  %485 = vmatpush.bf16.msra.mxu1 %v1642_v63  ;;  %v2262_v63 = vld [vmem:[#allocation8 + $0xf0] sm:$0xff] }
  0xc2   :  { %498 = vmatpush.bf16.msra.mxu2 %v1646_v5  ;;  %v2261_v5 = vld [vmem:[#allocation8 + $0xe8] sm:$0xff] }
  0xc3   :  { %v215_v44 = vsel %vm213_vm10, %v214_v36, %v2670_v24 }
  0xc4   :  { %v216_v48 = vclz %v215_v44  ;;  %471 = vmatpush.bf16.msra.mxu0 %v1654_v45  ;;  %v237_v44 = vsel %vm2681_vm13, 0, %v235_v42 }
  0xc5   :  { %511 = vmatpush.bf16.msra.mxu3 %v1650_v7  ;;  %486 = vmatpush.bf16.msra.mxu1 %v1626_v18  ;;  %v94_v7 = vld [vmem:[#allocation3 + $0x2] sm:$0xf] }
  0xc6   :  { %v1617_v58 = vadd.s32 4294967294, %v216_v48  ;;  %499 = vmatpush.bf16.msra.mxu2 %v1630_v22  ;;  %v254_v48 = vand.u32 3, %v237_v44  ;;  %v299_v14 = vperm.slane %v94_v7, 1  ;;  %v2259_v18 = vld [vmem:[#allocation8 + $0xd8] sm:$0xff]  ;;  %v2256_v44 = vld [vmem:[#allocation8 + $0xc0] sm:$0xff] }
  0xc8   :  { %vm1618_vm11 = vcmp.lt.s32.totalorder %v1617_v58, 0  ;;  %472 = vmatpush.bf16.msra.mxu0 %v1638_v39  ;;  %vm256_vm14 = vcmp.eq.s32.totalorder %v254_v48, 0  ;;  %vm259_vm15 = vcmp.eq.s32.totalorder %v254_v48, 2  ;;  %vm255_vm0 = vcmp.lt.s32.totalorder %v254_v48, 2  ;;  %v2263_v39 = vld [vmem:[#allocation8 + $0xf8] sm:$0xff] }
  0xc9   :  { %v219_v3 = vsel %vm1618_vm11, 0, %v1617_v58  ;;  %512 = vmatpush.bf16.msra.mxu3 %v1634_v23  ;;  %874 = vmatpush.bf16.msrb.mxu1 %v2247_v57  ;;  %v2238_v58 = vld [vmem:[#allocation8 + $0x30] sm:$0xff] }
  0xca   :  { %v220_v12 = vsub.s32 32, %v219_v3  ;;  %v224_v13 = vsub.s32 4294967266, %v219_v3  ;;  %v221_v20 = vshll.u32 %v2670_v24, %v219_v3  ;;  %887 = vmatpush.bf16.msrb.mxu2 %v2255_v60  ;;  %v2253_v3 = vld [vmem:[#allocation8 + $0xa8] sm:$0xff]  ;;  %v2258_v24 = vld [vmem:[#allocation8 + $0xd0] sm:$0xff] }
  0xcc   :  { %v222_v21 = vshrl.u32 %v204_v11, %v220_v12  ;;  %v225_v15 = vadd.s32 127, %v224_v13  ;;  %473 = vmatpush.bf16.msra.mxu0 %v1622_v19  ;;  %v2252_v11 = vld [vmem:[#allocation8 + $0xa0] sm:$0xff]  ;;  %v298_v13 = vperm.slane %v94_v7, 0  ;;  %v2242_v19 = vld [vmem:[#allocation8 + $0x50] sm:$0xff] }
  0xcd   :  { %875 = vmatpush.bf16.msrb.mxu1 %v2246_v59  ;;  %900 = vmatpush.bf16.msrb.mxu3 %v2263_v39  ;;  %v2260_v12 = vld [vmem:[#allocation8 + $0xe0] sm:$0xff] }
  0xce   :  { %v223_v25 = vor.u32 %v222_v21, %v221_v20  ;;  %v226_v26 = vshll.u32 %v225_v15, 23  ;;  %888 = vmatpush.bf16.msrb.mxu2 %v2254_v62  ;;  %v2251_v15 = vld [vmem:[#allocation8 + $0x98] sm:$0xff] }
  0xd0   :  { %v227_v29 = vor.u32 4788187, %v226_v26  ;;  %v230_v27 = vcvt.s32.f32 %v223_v25  ;;  %861 = vmatpush.bf16.msrb.mxu0 %v2239_v56  ;;  %v2233_v25 = vld [vmem:[#allocation8 + $0x8] sm:$0xff] }
  0xd1   :  { %876 = vmatpush.bf16.msrb.mxu1 %v2245_v61  ;;  %901 = vmatpush.bf16.msrb.mxu3 %v2262_v63  ;;  %v2241_v26 = vld [vmem:[#allocation8 + $0x48] sm:$0xff] }
  0xd2   :  { %v228_v30 = vand.u32 2147483647, %v227_v29  ;;  %889 = vmatpush.bf16.msrb.mxu2 %v2253_v3 }
  0xd4   :  { %v231_v28 = vmul.f32 %v230_v27, %v228_v30  ;;  %862 = vmatpush.bf16.msrb.mxu0 %v2238_v58  ;;  %v300_v27 = vperm.slane %v94_v7, 2 }
  0xd5   :  { %877 = vmatpush.bf16.msrb.mxu1 %v2244_v2  ;;  %902 = vmatpush.bf16.msrb.mxu3 %v2261_v5 }
  0xd6   :  { %v232_v0 = vxor.u32 2147483648, %v231_v28  ;;  %890 = vmatpush.bf16.msrb.mxu2 %v2252_v11 }
  0xd8   :  { %v233_v31 = vsel %vm112_vm12, %v232_v0, %v231_v28  ;;  %v301_v28 = vperm.slane %v94_v7, 3  ;;  %v2250_v0 = vld [vmem:[#allocation8 + $0x90] sm:$0xff] }
  0xd9   :  { %v236_v32 = vsel %vm2681_vm13, %v2616_v6, %v233_v31  ;;  %v2237_v6 = vld [vmem:[#allocation8 + $0x28] sm:$0xff]  ;;  %878 = vmatpush.bf16.msrb.mxu1 %v2243_v9  ;;  %903 = vmatpush.bf16.msrb.mxu3 %v2260_v12  ;;  %v2232_v31 = vld [vmem:[#allocation8] sm:$0xff] }
  0xda   :  { %v238_v33 = vmul.f32 %v236_v32, %v236_v32  ;;  %863 = vmatpush.bf16.msrb.mxu0 %v2237_v6  ;;  %891 = vmatpush.bf16.msrb.mxu2 %v2251_v15 }
  0xdc   :  { %v239_v34 = vmul.f32 -0.001358992, %v238_v33  ;;  %v246_v36 = vmul.f32 -0.00019511016, %v238_v33 }
  0xdd   :  { %879 = vmatpush.bf16.msrb.mxu1 %v2242_v19  ;;  %904 = vmatpush.bf16.msrb.mxu3 %v2259_v18 }
  0xde   :  { %v240_v37 = vadd.f32 0.041655596, %v239_v34  ;;  %v247_v38 = vadd.f32 0.008332121, %v246_v36  ;;  %864 = vmatpush.bf16.msrb.mxu0 %v2236_v1  ;;  %892 = vmatpush.bf16.msrb.mxu2 %v2250_v0 }
  0xe0   :  { %v241_v40 = vmul.f32 %v240_v37, %v238_v33  ;;  %v248_v41 = vmul.f32 %v247_v38, %v238_v33 }
  0xe1   :  { %880 = vmatpush.bf16.msrb.mxu1 %v2241_v26  ;;  %905 = vmatpush.bf16.msrb.mxu3 %v2258_v24 }
  0xe2   :  { %v242_v10 = vadd.f32 -0.4999988, %v241_v40  ;;  %v249_v43 = vadd.f32 -0.16666654, %v248_v41  ;;  %865 = vmatpush.bf16.msrb.mxu0 %v2235_v8  ;;  %v2249_v40 = vld [vmem:[#allocation8 + $0x88] sm:$0xff] }
  0xe3   :  { %v2257_v41 = vld [vmem:[#allocation8 + $0xc8] sm:$0xff]  ;;  %893 = vmatpush.bf16.msrb.mxu2 %v2249_v40 }
  0xe4   :  { %v243_v45 = vmul.f32 %v242_v10, %v238_v33  ;;  %v250_v17 = vmul.f32 %v249_v43, %v238_v33  ;;  %v2248_v43 = vld [vmem:[#allocation8 + $0x80] sm:$0xff] }
  0xe5   :  { %906 = vmatpush.bf16.msrb.mxu3 %v2257_v41 }
  0xe6   :  { %v244_v46 = vadd.f32 1.0, %v243_v45  ;;  %v251_v47 = vadd.f32 1.0, %v250_v17  ;;  %866 = vmatpush.bf16.msrb.mxu0 %v2234_v16 }
  0xe7   :  { %894 = vmatpush.bf16.msrb.mxu2 %v2248_v43  ;;  %v2334_v43 = vld [vmem:[#allocation9 + $0x234] sm:$0xf] }
  0xe8   :  { %v252_v49 = vmul.f32 %v251_v47, %v236_v32  ;;  %v260_v50 = vxor.u32 2147483648, %v244_v46  ;;  %v2240_v32 = vld [vmem:[#allocation8 + $0x40] sm:$0xff] }
  0xe9   :  { %881 = vmatpush.bf16.msrb.mxu1 %v2240_v32  ;;  %907 = vmatpush.bf16.msrb.mxu3 %v2256_v44 }
  0xea   :  { %v257_v51 = vxor.u32 2147483648, %v252_v49  ;;  %v261_v53 = vsel %vm259_vm15, %v260_v50, %v252_v49  ;;  %867 = vmatpush.bf16.msrb.mxu0 %v2233_v25 }
  0xec   :  { %v258_v52 = vsel %vm256_vm14, %v244_v46, %v257_v51 }
  0xed   :  { %v262_v4 = vsel %vm255_vm0, %v258_v52, %v261_v53 }
  0xee   :  { %v263_v54 = vsel %vm253_vm1, nan, %v262_v4  ;;  %868 = vmatpush.bf16.msrb.mxu0 %v2232_v31 }
  0xef   :  { %v264_v55 = vpack.c.bf16 %v263_v54, %v263_v54 }
  0xf1   :  { %474 = vmatmul.bf16.vlgmr.msra.gmra.mxu0 %v264_v55  ;;  %487 = vmatmul.bf16.vlgmr.msra.gmra.mxu1 %v264_v55 }
  0xf2   :  { %500 = vmatmul.bf16.vlgmr.msra.gmra.mxu2 %v264_v55  ;;  %513 = vmatmul.bf16.vlgmr.msra.gmra.mxu3 %v264_v55 }
 0x16e   :  { %v475_v20 = vpop.f32.mrf.mxu0  ;;  %v488_v21 = vpop.f32.mrf.mxu1 }
 0x16f   :  { %v2693_v22 = vadd.f32 %v475_v20, %v298_v13  ;;  %v2695_v23 = vadd.f32 %v488_v21, %v299_v14 }
 0x171   :  { %v1747_v29 = vmul.f32 -1.442695, %v2693_v22  ;;  %v1748_v30 = vmul.f32 -1.442695, %v2695_v23 }
 0x173   :  { %2367 = vpow2.f32 %v1747_v29 }
 0x174   :  { %2369 = vpow2.f32 %v1748_v30 }
 0x175   :  { %v501_v33 = vpop.f32.mrf.mxu2  ;;  %v514_v34 = vpop.f32.mrf.mxu3 }
 0x176   :  { %v2699_v36 = vadd.f32 %v501_v33, %v300_v27  ;;  %v2701_v35 = vadd.f32 %v514_v34, %v301_v28  ;;  %v477_v37 = vpop.f32.mrf.mxu0  ;;  %v490_v38 = vpop.f32.mrf.mxu1 }
 0x178   :  { %v1749_v42 = vmul.f32 -1.442695, %v2699_v36  ;;  %v1750_v10 = vmul.f32 -1.442695, %v2701_v35 }
 0x179   :  { %v2368_v45 = vpop.eup %2367 }
 0x17a   :  { %v2370_v17 = vpop.eup %2369  ;;  %v530_v46 = vadd.f32 1.0, %v2368_v45  ;;  %2371 = vpow2.f32 %v1749_v42  ;;  %v2162_v42 = vld [vmem:[#allocation9 + $0x230] sm:$0xf]  ;;  %v2164_v45 = vld [vmem:[#allocation9 + $0x258] sm:$0xf0] }
 0x17b   :  { %v531_v47 = vadd.f32 1.0, %v2370_v17  ;;  %2373 = vpow2.f32 %v1750_v10  ;;  %v2339_v10 = vld [vmem:[#allocation9 + $0x254] sm:$0xf0]  ;;  %v2122_v17 = vld [vmem:[#allocation9 + $0x1e0] sm:$0xf] }
 0x17c   :  { %2375 = vrcp.f32 %v530_v46  ;;  %v543_v58 = vand.u32 2147483647, %v530_v46  ;;  %v545_v59 = vand.u32 2147483648, %v530_v46  ;;  %vm539_vm4 = vweird.f32 %v530_v46 }
 0x17d   :  { %2377 = vrcp.f32 %v531_v47  ;;  %v503_v48 = vpop.f32.mrf.mxu2  ;;  %v516_v49 = vpop.f32.mrf.mxu3  ;;  %v558_v6 = vand.u32 2147483647, %v531_v47  ;;  %v560_v61 = vand.u32 2147483648, %v531_v47  ;;  %vm554_vm6 = vweird.f32 %v531_v47 }
 0x17e   :  { %v546_v2 = vor.u32 1.1754944e-38, %v545_v59  ;;  %vm544_vm7 = vcmp.eq.f32.partialorder %v543_v58, 8.507059e+37  ;;  %v2163_v44 = vor.u32 %v2339_v10, %v2162_v42  ;;  %v2324_v48 = vld [vmem:[#allocation9 + $0x1e4] sm:$0xf]  ;;  %v2124_v49 = vld [vmem:[#allocation9 + $0x208] sm:$0xf0] }
 0x17f   :  { %vm559_vm9 = vcmp.eq.f32.partialorder %v558_v6, 8.507059e+37  ;;  %v561_v9 = vor.u32 1.1754944e-38, %v560_v61  ;;  %v2044_v59 = vld [vmem:[#allocation9 + $0x168] sm:$0xf0]  ;;  %v2052_v42 = vld [vmem:[#allocation9 + $0x170] sm:$0xf0] }
 0x180   :  { %v2372_v50 = vpop.eup %2371  ;;  %1441 = vmatpush.bf16.msra.mxu0 %v2163_v44 }
 0x181   :  { %v2374_v51 = vpop.eup %2373  ;;  %v532_v52 = vadd.f32 1.0, %v2372_v50  ;;  %v2127_v50 = vor.u32 %v2324_v48, %v2124_v49  ;;  %v1884_v49 = vld [vmem:[#allocation9 + $0x28] sm:$0xf0] }
 0x182   :  { %v2376_v53 = vpop.eup %2375  ;;  %v2705_v4 = vadd.f32 1.0, %v2374_v51  ;;  %v2082_v51 = vld [vmem:[#allocation9 + $0x190] sm:$0xf] }
 0x183   :  { %v2378_v54 = vpop.eup %2377  ;;  %v535_v55 = vmul.f32 %v2376_v53, %v530_v46  ;;  %2379 = vrcp.f32 %v532_v52  ;;  %vm540_vm2 = vweird.f32 %v2376_v53  ;;  %v573_v20 = vand.u32 2147483647, %v532_v52  ;;  %v2329_v46 = vld [vmem:[#allocation9 + $0x204] sm:$0xf0] }
 0x184   :  { %v550_v56 = vmul.f32 %v2378_v54, %v531_v47  ;;  %2381 = vrcp.f32 %v2705_v4  ;;  %vm555_vm3 = vweird.f32 %v2378_v54  ;;  %vm541_vm5 = vmor %vm539_vm4, %vm540_vm2  ;;  %v575_v21 = vand.u32 2147483648, %v532_v52 }
 0x185   :  { %v536_v57 = vsub.f32 1.0, %v535_v55  ;;  %vm556_vm8 = vmor %vm554_vm6, %vm555_vm3  ;;  %vm569_vm11 = vweird.f32 %v532_v52  ;;  %v588_v29 = vand.u32 2147483647, %v2705_v4  ;;  %v590_v30 = vand.u32 2147483648, %v2705_v4  ;;  %v2042_v55 = vld [vmem:[#allocation9 + $0x140] sm:$0xf] }
 0x186   :  { %v551_v60 = vsub.f32 1.0, %v550_v56  ;;  %vm574_vm14 = vcmp.eq.f32.partialorder %v573_v20, 8.507059e+37  ;;  %vm584_vm15 = vweird.f32 %v2705_v4  ;;  %v2167_v47 = vor.u32 %v2334_v43, %v2164_v45  ;;  %v2309_v56 = vld [vmem:[#allocation9 + $0x164] sm:$0xf0]  ;;  %v1962_v20 = vld [vmem:[#allocation9 + $0xa0] sm:$0xf] }
 0x187   :  { %v537_v39 = vmul.f32 %v2376_v53, %v536_v57  ;;  %v591_v32 = vor.u32 1.1754944e-38, %v590_v30  ;;  %vm589_vm1 = vcmp.eq.f32.partialorder %v588_v29, 8.507059e+37  ;;  %v2304_v57 = vld [vmem:[#allocation9 + $0x144] sm:$0xf]  ;;  %v2043_v58 = vor.u32 %v2309_v56, %v2042_v55  ;;  %v2320_v29 = vld [vmem:[#allocation9 + $0x1bc] sm:$0xf0] }
 0x188   :  { %v552_v62 = vmul.f32 %v2378_v54, %v551_v60  ;;  %1454 = vmatpush.bf16.msra.mxu1 %v2167_v47  ;;  %v2170_v60 = vld [vmem:[#allocation9 + $0x238] sm:$0xf]  ;;  %v2047_v6 = vor.u32 %v2304_v57, %v2044_v59  ;;  %v1882_v45 = vld [vmem:[#allocation9] sm:$0xf]  ;;  %v2366_v47 = vld [vmem:[#allocation3 + $0x6] ss:$0 sm:$0xff] }
 0x189   :  { %v2380_v63 = vpop.eup %2379  ;;  %v538_v1 = vadd.f32 %v2376_v53, %v537_v39  ;;  %v2340_v39 = vld [vmem:[#allocation9 + $0x25c] sm:$0xf0]  ;;  %v2341_v55 = vld [vmem:[#allocation9 + $0x264] sm:$0xf0]  ;;  %v2336_v56 = vld [vmem:[#allocation9 + $0x244] sm:$0xf] }
 0x18a   :  { %v553_v3 = vadd.f32 %v2378_v54, %v552_v62  ;;  %v565_v5 = vmul.f32 %v2380_v63, %v532_v52  ;;  %v2382_v7 = vpop.eup %2381  ;;  %vm570_vm10 = vweird.f32 %v2380_v63  ;;  %v2319_v52 = vld [vmem:[#allocation9 + $0x1b4] sm:$0xf0]  ;;  %v2171_v61 = vor.u32 %v2340_v39, %v2170_v60  ;;  %v2335_v62 = vld [vmem:[#allocation9 + $0x23c] sm:$0xf]  ;;  %v2180_v57 = vld [vmem:[#allocation9 + $0x268] sm:$0xf0] }
 0x18b   :  { %v542_v8 = vsel %vm541_vm5, %v2376_v53, %v538_v1  ;;  %v580_v14 = vmul.f32 %v2382_v7, %v2705_v4  ;;  %vm585_vm12 = vweird.f32 %v2382_v7  ;;  %vm571_vm13 = vmor %vm569_vm11, %vm570_vm10  ;;  %v2083_v53 = vor.u32 %v2319_v52, %v2082_v51  ;;  %v2084_v4 = vld [vmem:[#allocation9 + $0x1b8] sm:$0xf0]  ;;  %v1970_v60 = vld [vmem:[#allocation9 + $0xa8] sm:$0xf] }
 0x18c   :  { %v547_v11 = vsel %vm544_vm7, %v546_v2, %v542_v8  ;;  %v557_v12 = vsel %vm556_vm8, %v2378_v54, %v553_v3  ;;  %v566_v13 = vsub.f32 1.0, %v565_v5  ;;  %vm586_vm0 = vmor %vm584_vm15, %vm585_vm12  ;;  %1455 = vmatpush.bf16.msra.mxu1 %v2127_v50  ;;  %1467 = vmatpush.bf16.msra.mxu2 %v2171_v61  ;;  %v2002_v2 = vld [vmem:[#allocation9 + $0xf0] sm:$0xf]  ;;  %v2299_v3 = vld [vmem:[#allocation9 + $0x114] sm:$0xf0]  ;;  %v2183_v59 = vor.u32 %v2336_v56, %v2180_v57 }
 0x18d   :  { %v594_v16 = vmul.f32 %v547_v11, %v2693_v22  ;;  %v562_v19 = vsel %vm559_vm9, %v561_v9, %v557_v12  ;;  %v581_v25 = vsub.f32 1.0, %v580_v14  ;;  %v576_v22 = vor.u32 1.1754944e-38, %v575_v21  ;;  %v2294_v5 = vld [vmem:[#allocation9 + $0xf4] sm:$0xf]  ;;  %v2004_v8 = vld [vmem:[#allocation9 + $0x118] sm:$0xf0] }
 0x18e   :  { %v595_v15 = vmul.f32 %v562_v19, %v2695_v23  ;;  %v567_v18 = vmul.f32 %v2380_v63, %v566_v13  ;;  %v2130_v9 = vld [vmem:[#allocation9 + $0x1e8] sm:$0xf]  ;;  %v2330_v11 = vld [vmem:[#allocation9 + $0x20c] sm:$0xf0]  ;;  %v2007_v12 = vor.u32 %v2294_v5, %v2004_v8  ;;  %v2325_v14 = vld [vmem:[#allocation9 + $0x1ec] sm:$0xf] }
 0x18f   :  { %v598_v26 = vpack.c.bf16 %v594_v16, %v594_v16  ;;  %v582_v0 = vmul.f32 %v2382_v7, %v581_v25  ;;  %v2131_v13 = vor.u32 %v2330_v11, %v2130_v9  ;;  %v2132_v16 = vld [vmem:[#allocation9 + $0x210] sm:$0xf0]  ;;  %v2289_v21 = vld [vmem:[#allocation9 + $0xc4] sm:$0xf0]  ;;  %v1964_v25 = vld [vmem:[#allocation9 + $0xc8] sm:$0xf0] }
 0x190   :  { %v599_v27 = vpack.c.bf16 %v595_v15, %v595_v15  ;;  %v568_v28 = vadd.f32 %v2380_v63, %v567_v18  ;;  %v2135_v19 = vor.u32 %v2325_v14, %v2132_v16  ;;  %v2284_v15 = vld [vmem:[#allocation9 + $0xa4] sm:$0xf]  ;;  %v1963_v18 = vor.u32 %v2289_v21, %v1962_v20  ;;  %v2300_v50 = vld [vmem:[#allocation9 + $0x11c] sm:$0xf0]  ;;  %v2290_v39 = vld [vmem:[#allocation9 + $0xcc] sm:$0xf0] }
 0x191   :  { %869 = vmatmul.bf16.vlgmr.msrb.gmra.mxu0 %v598_v26  ;;  %v583_v31 = vadd.f32 %v2382_v7, %v582_v0  ;;  %1468 = vmatpush.bf16.msra.mxu2 %v2131_v13  ;;  %v2090_v26 = vld [vmem:[#allocation9 + $0x198] sm:$0xf]  ;;  %v1967_v30 = vor.u32 %v2284_v15, %v1964_v25  ;;  %v2092_v0 = vld [vmem:[#allocation9 + $0x1c0] sm:$0xf0]  ;;  %v1971_v61 = vor.u32 %v2290_v39, %v1970_v60  ;;  %v2326_v8 = vld [vmem:[#allocation9 + $0x1f4] sm:$0xf] }
 0x192   :  { %v572_v24 = vsel %vm571_vm13, %v2380_v63, %v568_v28  ;;  %882 = vmatmul.bf16.vlgmr.msrb.gmra.mxu1 %v599_v27  ;;  %v2172_v63 = vld [vmem:[#allocation9 + $0x260] sm:$0xf0]  ;;  %v2091_v27 = vor.u32 %v2320_v29, %v2090_v26  ;;  %v2315_v28 = vld [vmem:[#allocation9 + $0x19c] sm:$0xf]  ;;  %v1930_v13 = vld [vmem:[#allocation9 + $0x58] sm:$0xf] }
 0x193   :  { %v577_v23 = vsel %vm574_vm14, %v576_v22, %v572_v24  ;;  %v587_v34 = vsel %vm586_vm0, %v2382_v7, %v583_v31  ;;  %v2175_v1 = vor.u32 %v2335_v62, %v2172_v63  ;;  %v2003_v7 = vor.u32 %v2299_v3, %v2002_v2  ;;  %v1922_v24 = vld [vmem:[#allocation9 + $0x50] sm:$0xf]  ;;  %v2279_v31 = vld [vmem:[#allocation9 + $0x74] sm:$0xf0]  ;;  %v1972_v62 = vld [vmem:[#allocation9 + $0xd0] sm:$0xf0] }
 0x194   :  { %v596_v33 = vmul.f32 %v577_v23, %v2699_v36  ;;  %v592_v37 = vsel %vm589_vm1, %v591_v32, %v587_v34  ;;  %v2123_v36 = vor.u32 %v2329_v46, %v2122_v17  ;;  %v2095_v22 = vor.u32 %v2315_v28, %v2092_v0  ;;  %v2274_v23 = vld [vmem:[#allocation9 + $0x54] sm:$0xf]  ;;  %v2050_v34 = vld [vmem:[#allocation9 + $0x148] sm:$0xf]  ;;  %v2264_v46 = vld [vmem:[#allocation9 + $0x4] sm:$0xf] }
 0x195   :  { %v597_v40 = vmul.f32 %v592_v37, %v2701_v35  ;;  %v2314_v35 = vld [vmem:[#allocation9 + $0x194] sm:$0xf]  ;;  %1480 = vmatpush.bf16.msra.mxu3 %v2175_v1  ;;  %1469 = vmatpush.bf16.msra.mxu2 %v2091_v27  ;;  %v1923_v32 = vor.u32 %v2279_v31, %v1922_v24  ;;  %v2310_v37 = vld [vmem:[#allocation9 + $0x16c] sm:$0xf0]  ;;  %v2269_v17 = vld [vmem:[#allocation9 + $0x24] sm:$0xf0]  ;;  %v1887_v51 = vor.u32 %v2264_v46, %v1884_v49 }
 0x196   :  { %v600_v38 = vpack.c.bf16 %v596_v33, %v596_v33  ;;  %1442 = vmatpush.bf16.msra.mxu0 %v2123_v36  ;;  %v2087_v54 = vor.u32 %v2314_v35, %v2084_v4  ;;  %v1924_v33 = vld [vmem:[#allocation9 + $0x78] sm:$0xf0]  ;;  %v1883_v48 = vor.u32 %v2269_v17, %v1882_v45  ;;  %v2010_v36 = vld [vmem:[#allocation9 + $0xf8] sm:$0xf]  ;;  %v2178_v4 = vld [vmem:[#allocation9 + $0x240] sm:$0xf] }
 0x197   :  { %v601_v41 = vpack.c.bf16 %v597_v40, %v597_v40  ;;  %v2051_v40 = vor.u32 %v2310_v37, %v2050_v34  ;;  %v2011_v52 = vor.u32 %v2300_v50, %v2010_v36  ;;  %v2295_v35 = vld [vmem:[#allocation9 + $0xfc] sm:$0xf]  ;;  %v2138_v63 = vld [vmem:[#allocation9 + $0x1f0] sm:$0xf]  ;;  %v2331_v1 = vld [vmem:[#allocation9 + $0x214] sm:$0xf0] }
 0x198   :  { %895 = vmatmul.bf16.vlgmr.msrb.gmra.mxu2 %v600_v38  ;;  %1456 = vmatpush.bf16.msra.mxu1 %v2087_v54  ;;  %v1927_v38 = vor.u32 %v2274_v23, %v1924_v33  ;;  %v2140_v9 = vld [vmem:[#allocation9 + $0x218] sm:$0xf0]  ;;  %v2280_v14 = vld [vmem:[#allocation9 + $0x7c] sm:$0xf0]  ;;  %v1932_v20 = vld [vmem:[#allocation9 + $0x80] sm:$0xf0] }
 0x199   :  { %908 = vmatmul.bf16.vlgmr.msrb.gmra.mxu3 %v601_v41  ;;  %v2305_v41 = vld [vmem:[#allocation9 + $0x14c] sm:$0xf]  ;;  %1470 = vmatpush.bf16.msra.mxu2 %v2051_v40  ;;  %v2275_v16 = vld [vmem:[#allocation9 + $0x5c] sm:$0xf]  ;;  %v2098_v21 = vld [vmem:[#allocation9 + $0x1a0] sm:$0xf] }
 0x19a   :  { %1443 = vmatpush.bf16.msra.mxu0 %v2083_v53  ;;  %1481 = vmatpush.bf16.msra.mxu3 %v2135_v19  ;;  %v2055_v43 = vor.u32 %v2305_v41, %v2052_v42  ;;  %v2012_v53 = vld [vmem:[#allocation9 + $0x120] sm:$0xf0]  ;;  %v1931_v19 = vor.u32 %v2280_v14, %v1930_v13  ;;  %v2321_v15 = vld [vmem:[#allocation9 + $0x1c4] sm:$0xf0]  ;;  %v1935_v25 = vor.u32 %v2275_v16, %v1932_v20  ;;  %v2270_v24 = vld [vmem:[#allocation9 + $0x2c] sm:$0xf0] }
 0x19b   :  { %v2015_v54 = vor.u32 %v2295_v35, %v2012_v53  ;;  %v2099_v26 = vor.u32 %v2321_v15, %v2098_v21  ;;  %v2316_v29 = vld [vmem:[#allocation9 + $0x1a4] sm:$0xf]  ;;  %v2265_v31 = vld [vmem:[#allocation9 + $0xc] sm:$0xf]  ;;  %v1892_v33 = vld [vmem:[#allocation9 + $0x30] sm:$0xf0] }
 0x19c   :  { %1457 = vmatpush.bf16.msra.mxu1 %v2047_v6  ;;  %v2285_v6 = vld [vmem:[#allocation9 + $0xac] sm:$0xf]  ;;  %v2058_v34 = vld [vmem:[#allocation9 + $0x150] sm:$0xf]  ;;  %v2311_v37 = vld [vmem:[#allocation9 + $0x174] sm:$0xf0]  ;;  %v1895_v40 = vor.u32 %v2265_v31, %v1892_v33 }
 0x19d   :  { %1471 = vmatpush.bf16.msra.mxu2 %v2011_v52  ;;  %v1975_v5 = vor.u32 %v2285_v6, %v1972_v62  ;;  %v2059_v41 = vor.u32 %v2311_v37, %v2058_v34  ;;  %v2306_v42 = vld [vmem:[#allocation9 + $0x154] sm:$0xf]  ;;  %v2342_v45 = vld [vmem:[#allocation9 + $0x26c] sm:$0xf0]  ;;  %v2337_v17 = vld [vmem:[#allocation9 + $0x24c] sm:$0xf] }
 0x19e   :  { %1444 = vmatpush.bf16.msra.mxu0 %v2043_v58  ;;  %1482 = vmatpush.bf16.msra.mxu3 %v2095_v22  ;;  %v2179_v58 = vor.u32 %v2341_v55, %v2178_v4  ;;  %v1890_v22 = vld [vmem:[#allocation9 + $0x8] sm:$0xf]  ;;  %v2188_v46 = vld [vmem:[#allocation9 + $0x270] sm:$0xf0]  ;;  %v2018_v36 = vld [vmem:[#allocation9 + $0x100] sm:$0xf] }
 0x19f   :  { %v2191_v49 = vor.u32 %v2337_v17, %v2188_v46  ;;  %v2301_v50 = vld [vmem:[#allocation9 + $0x124] sm:$0xf0]  ;;  %v2020_v52 = vld [vmem:[#allocation9 + $0x128] sm:$0xf0]  ;;  %v2146_v4 = vld [vmem:[#allocation9 + $0x1f8] sm:$0xf] }
 0x1a0   :  { %1458 = vmatpush.bf16.msra.mxu1 %v2007_v12  ;;  %v2143_v12 = vor.u32 %v2326_v8, %v2140_v9  ;;  %v2019_v35 = vor.u32 %v2301_v50, %v2018_v36  ;;  %v2327_v55 = vld [vmem:[#allocation9 + $0x1fc] sm:$0xf]  ;;  %v2291_v60 = vld [vmem:[#allocation9 + $0xd4] sm:$0xf0]  ;;  %v2286_v6 = vld [vmem:[#allocation9 + $0xb4] sm:$0xf] }
 0x1a1   :  { %1472 = vmatpush.bf16.msra.mxu2 %v1971_v61  ;;  %v1980_v61 = vld [vmem:[#allocation9 + $0xd8] sm:$0xf0]  ;;  %v2106_v62 = vld [vmem:[#allocation9 + $0x1a8] sm:$0xf]  ;;  %v2276_v13 = vld [vmem:[#allocation9 + $0x64] sm:$0xf] }
 0x1a2   :  { %1445 = vmatpush.bf16.msra.mxu0 %v2003_v7  ;;  %1483 = vmatpush.bf16.msra.mxu3 %v2055_v43  ;;  %v2139_v7 = vor.u32 %v2331_v1, %v2138_v63  ;;  %v2186_v43 = vld [vmem:[#allocation9 + $0x248] sm:$0xf]  ;;  %v1940_v14 = vld [vmem:[#allocation9 + $0x88] sm:$0xf0]  ;;  %v2066_v16 = vld [vmem:[#allocation9 + $0x158] sm:$0xf] }
 0x1a3   :  { %v2307_v21 = vld [vmem:[#allocation9 + $0x15c] sm:$0xf]  ;;  %v2068_v15 = vld [vmem:[#allocation9 + $0x180] sm:$0xf0]  ;;  %v2302_v31 = vld [vmem:[#allocation9 + $0x12c] sm:$0xf0] }
 0x1a4   :  { %1459 = vmatpush.bf16.msra.mxu1 %v1967_v30  ;;  %v2100_v30 = vld [vmem:[#allocation9 + $0x1c8] sm:$0xf0]  ;;  %v1948_v36 = vld [vmem:[#allocation9 + $0x90] sm:$0xf0] }
 0x1a5   :  { %1473 = vmatpush.bf16.msra.mxu2 %v1931_v19  ;;  %v2103_v28 = vor.u32 %v2316_v29, %v2100_v30  ;;  %v2312_v19 = vld [vmem:[#allocation9 + $0x17c] sm:$0xf0]  ;;  %v1898_v29 = vld [vmem:[#allocation9 + $0x10] sm:$0xf] }
 0x1a6   :  { %1446 = vmatpush.bf16.msra.mxu0 %v1963_v18  ;;  %1484 = vmatpush.bf16.msra.mxu3 %v2015_v54  ;;  %v2332_v54 = vld [vmem:[#allocation9 + $0x21c] sm:$0xf0]  ;;  %v2067_v30 = vor.u32 %v2312_v19, %v2066_v16  ;;  %v2114_v19 = vld [vmem:[#allocation9 + $0x1b0] sm:$0xf] }
 0x1a7   :  { %v2147_v57 = vor.u32 %v2332_v54, %v2146_v4  ;;  %v1906_v54 = vld [vmem:[#allocation9 + $0x18] sm:$0xf] }
 0x1a8   :  { %1460 = vmatpush.bf16.msra.mxu1 %v1927_v38 }
 0x1aa   :  { %1447 = vmatpush.bf16.msra.mxu0 %v1923_v32  ;;  %1485 = vmatpush.bf16.msra.mxu3 %v1975_v5  ;;  %v1891_v32 = vor.u32 %v2270_v24, %v1890_v22  ;;  %v2317_v5 = vld [vmem:[#allocation9 + $0x1ac] sm:$0xf]  ;;  %v1900_v22 = vld [vmem:[#allocation9 + $0x38] sm:$0xf0]  ;;  %v2026_v24 = vld [vmem:[#allocation9 + $0x108] sm:$0xf] }
 0x1ab   :  { %v2027_v37 = vor.u32 %v2302_v31, %v2026_v24  ;;  %v2303_v24 = vld [vmem:[#allocation9 + $0x134] sm:$0xf0]  ;;  %v2298_v31 = vld [vmem:[#allocation9 + $0x114] sm:$0xf] }
 0x1ac   :  { %1461 = vmatpush.bf16.msra.mxu1 %v1887_v51  ;;  %1474 = vmatpush.bf16.msra.mxu2 %v1891_v32  ;;  %v2296_v51 = vld [vmem:[#allocation9 + $0x104] sm:$0xf]  ;;  %v2028_v32 = vld [vmem:[#allocation9 + $0x130] sm:$0xf0] }
 0x1ad   :  { %v2023_v53 = vor.u32 %v2296_v51, %v2020_v52 }
 0x1ae   :  { %1448 = vmatpush.bf16.msra.mxu0 %v1883_v48  ;;  %1486 = vmatpush.bf16.msra.mxu3 %v1935_v25  ;;  %v2187_v48 = vor.u32 %v2342_v45, %v2186_v43  ;;  %v1988_v43 = vld [vmem:[#allocation9 + $0xe0] sm:$0xf0] }
 0x1b0   :  { %1506 = vmatpush.bf16.msrb.mxu1 %v2183_v59  ;;  %1519 = vmatpush.bf16.msrb.mxu2 %v2187_v48  ;;  %v1978_v59 = vld [vmem:[#allocation9 + $0xb0] sm:$0xf] }
 0x1b1   :  { %v1979_v1 = vor.u32 %v2291_v60, %v1978_v59  ;;  %v2282_v48 = vld [vmem:[#allocation9 + $0x8c] sm:$0xf0] }
 0x1b2   :  { %1493 = vmatpush.bf16.msrb.mxu0 %v2179_v58  ;;  %1487 = vmatpush.bf16.msra.mxu3 %v1895_v40  ;;  %v2148_v58 = vld [vmem:[#allocation9 + $0x220] sm:$0xf0] }
 0x1b3   :  { %v2151_v39 = vor.u32 %v2327_v55, %v2148_v58  ;;  %v2272_v55 = vld [vmem:[#allocation9 + $0x3c] sm:$0xf0] }
 0x1b4   :  { %1507 = vmatpush.bf16.msrb.mxu1 %v2143_v12  ;;  %1520 = vmatpush.bf16.msrb.mxu2 %v2147_v57  ;;  %v2281_v12 = vld [vmem:[#allocation9 + $0x84] sm:$0xf0]  ;;  %v1908_v57 = vld [vmem:[#allocation9 + $0x40] sm:$0xf0] }
 0x1b6   :  { %1494 = vmatpush.bf16.msrb.mxu0 %v2139_v7  ;;  %1532 = vmatpush.bf16.msrb.mxu3 %v2191_v49  ;;  %v2108_v7 = vld [vmem:[#allocation9 + $0x1d0] sm:$0xf0]  ;;  %v2277_v49 = vld [vmem:[#allocation9 + $0x6c] sm:$0xf] }
 0x1b7   :  { %v2111_v9 = vor.u32 %v2317_v5, %v2108_v7  ;;  %v1951_v4 = vor.u32 %v2277_v49, %v1948_v36  ;;  %v2196_v5 = vld [vmem:[#allocation9 + $0x278] sm:$0xf0]  ;;  %v2273_v49 = vld [vmem:[#allocation9 + $0x44] sm:$0xf0]  ;;  %v2268_v36 = vld [vmem:[#allocation9 + $0x24] sm:$0xf] }
 0x1b8   :  { %1508 = vmatpush.bf16.msrb.mxu1 %v2103_v28  ;;  %v2271_v28 = vld [vmem:[#allocation9 + $0x34] sm:$0xf0] }
 0x1b9   :  { %v1899_v33 = vor.u32 %v2271_v28, %v1898_v29  ;;  %v2313_v29 = vld [vmem:[#allocation9 + $0x184] sm:$0xf0] }
 0x1ba   :  { %1495 = vmatpush.bf16.msrb.mxu0 %v2099_v26  ;;  %1533 = vmatpush.bf16.msrb.mxu3 %v2151_v39  ;;  %v1943_v26 = vor.u32 %v2276_v13, %v1940_v14  ;;  %v1907_v39 = vor.u32 %v2272_v55, %v1906_v54  ;;  %v2328_v13 = vld [vmem:[#allocation9 + $0x204] sm:$0xf]  ;;  %v2156_v14 = vld [vmem:[#allocation9 + $0x228] sm:$0xf0] }
 0x1bb   :  { %v2159_v16 = vor.u32 %v2328_v13, %v2156_v14 }
 0x1be   :  { %1496 = vmatpush.bf16.msrb.mxu0 %v2059_v41  ;;  %1534 = vmatpush.bf16.msrb.mxu3 %v2111_v9  ;;  %v1986_v41 = vld [vmem:[#allocation9 + $0xb8] sm:$0xf]  ;;  %v2154_v9 = vld [vmem:[#allocation9 + $0x200] sm:$0xf] }
 0x1c2   :  { %1497 = vmatpush.bf16.msrb.mxu0 %v2019_v35 }
 0x1c6   :  { %1498 = vmatpush.bf16.msrb.mxu0 %v1979_v1  ;;  %v2194_v1 = vld [vmem:[#allocation9 + $0x250] sm:$0xf] }
 0x20e   :  { %v870_v10 = vpop.f32.mrf.mxu0 }
 0x20f   :  { %v883_v44 = vpop.f32.mrf.mxu1  ;;  %v871_v2 = vadd.f32 %v2366_v47, %v870_v10  ;;  %v2060_v10 = vld [vmem:[#allocation9 + $0x178] sm:$0xf0] }
 0x211   :  { %v884_v18 = vadd.f32 %v883_v44, %v871_v2  ;;  %v2063_v44 = vor.u32 %v2306_v42, %v2060_v10  ;;  %v1983_v2 = vor.u32 %v2286_v6, %v1980_v61  ;;  %v2292_v42 = vld [vmem:[#allocation9 + $0xdc] sm:$0xf0]  ;;  %v2287_v10 = vld [vmem:[#allocation9 + $0xbc] sm:$0xf] }
 0x212   :  { %v1987_v17 = vor.u32 %v2292_v42, %v1986_v41  ;;  %v1991_v46 = vor.u32 %v2287_v10, %v1988_v43  ;;  %v1996_v41 = vld [vmem:[#allocation9 + $0xe8] sm:$0xf0]  ;;  %v1954_v43 = vld [vmem:[#allocation9 + $0x70] sm:$0xf] }
 0x213   :  { %1509 = vmatpush.bf16.msrb.mxu1 %v2063_v44 }
 0x216   :  { %v872_v3 = vpop.f32.mrf.mxu0 }
 0x217   :  { %v885_v11 = vpop.f32.mrf.mxu1  ;;  %1510 = vmatpush.bf16.msrb.mxu1 %v2023_v53  ;;  %v2322_v3 = vld [vmem:[#allocation9 + $0x1cc] sm:$0xf0] }
 0x218   :  { %v2107_v8 = vor.u32 %v2322_v3, %v2106_v62  ;;  %v1938_v11 = vld [vmem:[#allocation9 + $0x60] sm:$0xf]  ;;  %v2338_v3 = vld [vmem:[#allocation9 + $0x254] sm:$0xf] }
 0x219   :  { %v1939_v25 = vor.u32 %v2281_v12, %v1938_v11  ;;  %v2333_v11 = vld [vmem:[#allocation9 + $0x224] sm:$0xf0] }
 0x21a   :  { %1521 = vmatpush.bf16.msrb.mxu2 %v2107_v8  ;;  %v2199_v8 = vor.u32 %v2338_v3, %v2196_v5 }
 0x21b   :  { %v896_v27 = vpop.f32.mrf.mxu2  ;;  %1511 = vmatpush.bf16.msrb.mxu1 %v1983_v2  ;;  %1499 = vmatpush.bf16.msrb.mxu0 %v1939_v25  ;;  %v2343_v2 = vld [vmem:[#allocation9 + $0x274] sm:$0xf0] }
 0x21c   :  { %v897_v0 = vadd.f32 %v896_v27, %v884_v18  ;;  %v909_v23 = vpop.f32.mrf.mxu3  ;;  %v2071_v27 = vor.u32 %v2307_v21, %v2068_v15  ;;  %v2195_v7 = vor.u32 %v2343_v2, %v2194_v1  ;;  %v2318_v21 = vld [vmem:[#allocation9 + $0x1b4] sm:$0xf]  ;;  %v2116_v15 = vld [vmem:[#allocation9 + $0x1d8] sm:$0xf0] }
 0x21d   :  { %v2119_v25 = vor.u32 %v2318_v21, %v2116_v15  ;;  %v1018_v15 = vld [vmem:[%s2750_s5 + $0x8] sm:$0x3] }
 0x21e   :  { %v2716_v38 = vadd.f32 %v909_v23, %v897_v0  ;;  %v2266_v0 = vld [vmem:[#allocation9 + $0x14] sm:$0xf]  ;;  %v2297_v23 = vld [vmem:[#allocation9 + $0x10c] sm:$0xf]  ;;  %1522 = vmatpush.bf16.msrb.mxu2 %v2067_v30  ;;  %1535 = vmatpush.bf16.msrb.mxu3 %v2071_v27  ;;  %v2308_v30 = vld [vmem:[#allocation9 + $0x164] sm:$0xf] }
 0x21f   :  { %1512 = vmatpush.bf16.msrb.mxu1 %v1943_v26  ;;  %v1903_v34 = vor.u32 %v2266_v0, %v1900_v22  ;;  %v2031_v40 = vor.u32 %v2297_v23, %v2028_v32  ;;  %1500 = vmatpush.bf16.msrb.mxu0 %v1899_v33  ;;  %v2074_v26 = vld [vmem:[#allocation9 + $0x160] sm:$0xf]  ;;  %v2076_v27 = vld [vmem:[#allocation9 + $0x188] sm:$0xf0]  ;;  %v2034_v22 = vld [vmem:[#allocation9 + $0x110] sm:$0xf] }
 0x220   :  { %v1879_v47 = vmul.f32 -1.442695, %v2716_v38  ;;  %913 = vst [vmem:[#allocation11] sm:$0xff] %v2716_v38  ;;  %v2075_v28 = vor.u32 %v2313_v29, %v2074_v26  ;;  %v2079_v0 = vor.u32 %v2308_v30, %v2076_v27  ;;  %v2036_v23 = vld [vmem:[#allocation9 + $0x138] sm:$0xf0]  ;;  %v2035_v32 = vor.u32 %v2303_v24, %v2034_v22 }
 0x221   :  { %v2039_v33 = vor.u32 %v2298_v31, %v2036_v23  ;;  %1591 = dma.vmem_to_hbm [thread:$0]  %s1587_s28, 128, %s1589_s26, [#allocation5]  }
 0x222   :  { %2383 = vpow2.f32 %v1879_v47  ;;  %1523 = vmatpush.bf16.msrb.mxu2 %v2027_v37  ;;  %1536 = vmatpush.bf16.msrb.mxu3 %v2031_v40  ;;  %v1946_v47 = vld [vmem:[#allocation9 + $0x68] sm:$0xf]  ;;  %v2288_v40 = vld [vmem:[#allocation9 + $0xc4] sm:$0xf] }
 0x223   :  { %v898_v56 = vpop.f32.mrf.mxu2  ;;  %1513 = vmatpush.bf16.msrb.mxu1 %v1903_v34  ;;  %v1947_v53 = vor.u32 %v2282_v48, %v1946_v47  ;;  %v1994_v34 = vld [vmem:[#allocation9 + $0xc0] sm:$0xf]  ;;  %v2293_v37 = vld [vmem:[#allocation9 + $0xe4] sm:$0xf0]  ;;  %v1999_v10 = vor.u32 %v2288_v40, %v1996_v41 }
 0x224   :  { %v911_v63 = vpop.f32.mrf.mxu3  ;;  %v2267_v56 = vld [vmem:[#allocation9 + $0x1c] sm:$0xf]  ;;  %v1995_v42 = vor.u32 %v2293_v37, %v1994_v34  ;;  %v1914_v48 = vld [vmem:[#allocation9 + $0x20] sm:$0xf] }
 0x225   :  { %v1911_v6 = vor.u32 %v2267_v56, %v1908_v57 }
 0x226   :  { %1524 = vmatpush.bf16.msrb.mxu2 %v1987_v17  ;;  %1537 = vmatpush.bf16.msrb.mxu3 %v1991_v46  ;;  %v1956_v17 = vld [vmem:[#allocation9 + $0x98] sm:$0xf0] }
 0x228   :  { %v2384_v20 = vpop.eup %2383 }
 0x229   :  { %v917_v18 = vadd.f32 1.0, %v2384_v20  ;;  %v2323_v20 = vld [vmem:[#allocation9 + $0x1d4] sm:$0xf0] }
 0x22a   :  { %1525 = vmatpush.bf16.msrb.mxu2 %v1947_v53  ;;  %1538 = vmatpush.bf16.msrb.mxu3 %v1951_v4 }
 0x22b   :  { %2385 = vrcp.f32 %v917_v18  ;;  %v927_v51 = vand.u32 2147483647, %v917_v18  ;;  %v929_v52 = vand.u32 2147483648, %v917_v18  ;;  %vm923_vm3 = vweird.f32 %v917_v18 }
 0x22d   :  { %v930_v59 = vor.u32 1.1754944e-38, %v929_v52  ;;  %vm928_vm5 = vcmp.eq.f32.partialorder %v927_v51, 8.507059e+37  ;;  %v1915_v51 = vor.u32 %v2273_v49, %v1914_v48 }
 0x22e   :  { %1526 = vmatpush.bf16.msrb.mxu2 %v1907_v39  ;;  %1539 = vmatpush.bf16.msrb.mxu3 %v1911_v6 }
 0x231   :  { %v2386_v44 = vpop.eup %2385 }
 0x232   :  { %v919_v45 = vmul.f32 %v2386_v44, %v917_v18  ;;  %vm924_vm2 = vweird.f32 %v2386_v44  ;;  %v2115_v18 = vor.u32 %v2323_v20, %v2114_v19 }
 0x233   :  { %vm925_vm4 = vmor %vm923_vm3, %vm924_vm2 }
 0x234   :  { %v920_v50 = vsub.f32 1.0, %v919_v45  ;;  %v2278_v45 = vld [vmem:[#allocation9 + $0x74] sm:$0xf] }
 0x235   :  { %v1959_v47 = vor.u32 %v2278_v45, %v1956_v17 }
 0x236   :  { %v921_v35 = vmul.f32 %v2386_v44, %v920_v50  ;;  %v1916_v50 = vld [vmem:[#allocation9 + $0x48] sm:$0xf0] }
 0x237   :  { %v1919_v52 = vor.u32 %v2268_v36, %v1916_v50 }
 0x238   :  { %v922_v58 = vadd.f32 %v2386_v44, %v921_v35  ;;  %v1017_v35 = vld [vmem:[%s2750_s5] sm:$0xff] }
 0x239   :  { %v1021_v53 = vperm.slane %v1017_v35, 0  ;;  %v1022_v4 = vperm.slane %v1017_v35, 1  ;;  %v1025_v1 = vperm.slane %v1017_v35, 4  ;;  %v1026_v2 = vperm.slane %v1017_v35, 5 }
 0x23a   :  { %v926_v60 = vsel %vm925_vm4, %v2386_v44, %v922_v58  ;;  %v2283_v44 = vld [vmem:[#allocation9 + $0x94] sm:$0xf0]  ;;  %v1023_v58 = vperm.slane %v1017_v35, 2  ;;  %v1028_v13 = vperm.slane %v1017_v35, 7 }
 0x23b   :  { %v931_v61 = vsel %vm928_vm5, %v930_v59, %v926_v60  ;;  %v1955_v46 = vor.u32 %v2283_v44, %v1954_v43  ;;  %v1024_v59 = vperm.slane %v1017_v35, 3 }
 0x23c   :  { %v933_v62 = vmul.f32 %v931_v61, %v2716_v38  ;;  %v2155_v38 = vor.u32 %v2333_v11, %v2154_v9 }
 0x23e   :  { %v934_v63 = vpack.c.bf16 %v933_v62, %v933_v62 }
 0x240   :  { %935 = vst [vmem:[#allocation2] sm:$0xf] %v934_v63 }
 0x247   :  { %v2721_v12 = vld [vmem:[#allocation2] sm:$0xf] }
 0x248   :  { %1449 = vmatmul.bf16.vlgmr.msra.gmra.mxu0 %v2721_v12  ;;  %1462 = vmatmul.bf16.vlgmr.msra.gmra.mxu1 %v2721_v12 }
 0x249   :  { %1475 = vmatmul.bf16.vlgmr.msra.gmra.mxu2 %v2721_v12  ;;  %1488 = vmatmul.bf16.vlgmr.msra.gmra.mxu3 %v2721_v12 }
 0x24a   :  { %1545 = vmatpush.bf16.msra.mxu0 %v2195_v7  ;;  %1558 = vmatpush.bf16.msra.mxu1 %v2199_v8 }
 0x24e   :  { %1546 = vmatpush.bf16.msra.mxu0 %v2155_v38  ;;  %1559 = vmatpush.bf16.msra.mxu1 %v2159_v16 }
 0x252   :  { %1547 = vmatpush.bf16.msra.mxu0 %v2115_v18  ;;  %1560 = vmatpush.bf16.msra.mxu1 %v2119_v25  ;;  %v1029_v18 = vperm.slane %v1018_v15, 0  ;;  %v1030_v25 = vperm.slane %v1018_v15, 1 }
 0x256   :  { %1548 = vmatpush.bf16.msra.mxu0 %v2075_v28  ;;  %1561 = vmatpush.bf16.msra.mxu1 %v2079_v0 }
 0x258   :  { %1501 = vmatmul.bf16.vlgmr.msrb.gmra.mxu0 %v2721_v12  ;;  %1514 = vmatmul.bf16.vlgmr.msrb.gmra.mxu1 %v2721_v12 }
 0x259   :  { %1527 = vmatmul.bf16.vlgmr.msrb.gmra.mxu2 %v2721_v12  ;;  %1540 = vmatmul.bf16.vlgmr.msrb.gmra.mxu3 %v2721_v12 }
 0x25a   :  { %1549 = vmatpush.bf16.msra.mxu0 %v2035_v32  ;;  %1562 = vmatpush.bf16.msra.mxu1 %v2039_v33 }
 0x25e   :  { %1550 = vmatpush.bf16.msra.mxu0 %v1995_v42  ;;  %1563 = vmatpush.bf16.msra.mxu1 %v1999_v10 }
 0x262   :  { %1551 = vmatpush.bf16.msra.mxu0 %v1955_v46  ;;  %1564 = vmatpush.bf16.msra.mxu1 %v1959_v47 }
 0x266   :  { %1552 = vmatpush.bf16.msra.mxu0 %v1915_v51  ;;  %1565 = vmatpush.bf16.msra.mxu1 %v1919_v52 }
 0x269   :  { %1553 = vmatmul.bf16.vlgmr.msra.gmra.mxu0 %v2721_v12  ;;  %1566 = vmatmul.bf16.vlgmr.msra.gmra.mxu1 %v2721_v12  ;;  %v1027_v12 = vperm.slane %v1017_v35, 6 }
 0x2c5   :  { %v1450_v54 = vpop.f32.mrf.mxu0  ;;  %v1463_v55 = vpop.f32.mrf.mxu1 }
 0x2c6   :  { %v1451_v56 = vadd.f32 %v1450_v54, %v1021_v53  ;;  %v1464_v57 = vadd.f32 %v1463_v55, %v1022_v4 }
 0x2c8   :  { %1571 = vst [vmem:[#allocation12] sm:$0xff] %v1451_v56 }
 0x2c9   :  { %1572 = vst [vmem:[#allocation12 + $0x8] sm:$0xff] %v1464_v57 }
 0x2cc   :  { %v1476_v60 = vpop.f32.mrf.mxu2  ;;  %v1489_v39 = vpop.f32.mrf.mxu3 }
 0x2cd   :  { %v1477_v6 = vadd.f32 %v1476_v60, %v1023_v58  ;;  %v1490_v61 = vadd.f32 %v1489_v39, %v1024_v59  ;;  %v1452_v62 = vpop.f32.mrf.mxu0  ;;  %v1465_v63 = vpop.f32.mrf.mxu1 }
 0x2cf   :  { %1573 = vst [vmem:[#allocation12 + $0x10] sm:$0xff] %v1477_v6 }
 0x2d0   :  { %1574 = vst [vmem:[#allocation12 + $0x18] sm:$0xff] %v1490_v61 }
 0x2d4   :  { %v1478_v3 = vpop.f32.mrf.mxu2  ;;  %v1491_v5 = vpop.f32.mrf.mxu3 }
 0x2d5   :  { %v1502_v7 = vpop.f32.mrf.mxu0  ;;  %v1515_v8 = vpop.f32.mrf.mxu1 }
 0x2d6   :  { %v1503_v9 = vadd.f32 %v1502_v7, %v1025_v1  ;;  %v1516_v11 = vadd.f32 %v1515_v8, %v1026_v2 }
 0x2d8   :  { %1575 = vst [vmem:[#allocation12 + $0x20] sm:$0xff] %v1503_v9 }
 0x2d9   :  { %1576 = vst [vmem:[#allocation12 + $0x28] sm:$0xff] %v1516_v11 }
 0x2dc   :  { %v1528_v14 = vpop.f32.mrf.mxu2  ;;  %v1541_v38 = vpop.f32.mrf.mxu3 }
 0x2dd   :  { %v1529_v16 = vadd.f32 %v1528_v14, %v1027_v12  ;;  %v1542_v19 = vadd.f32 %v1541_v38, %v1028_v13  ;;  %v1504_v20 = vpop.f32.mrf.mxu0  ;;  %v1517_v21 = vpop.f32.mrf.mxu1 }
 0x2df   :  { %1577 = vst [vmem:[#allocation12 + $0x30] sm:$0xff] %v1529_v16 }
 0x2e0   :  { %1578 = vst [vmem:[#allocation12 + $0x38] sm:$0xff] %v1542_v19 }
 0x2e4   :  { %v1530_v26 = vpop.f32.mrf.mxu2  ;;  %v1543_v29 = vpop.f32.mrf.mxu3 }
 0x2e6   :  { %v1554_v30 = vpop.f32.mrf.mxu0  ;;  %v1567_v27 = vpop.f32.mrf.mxu1 }
 0x2e7   :  { %v1555_v28 = vadd.f32 %v1554_v30, %v1029_v18  ;;  %v1568_v0 = vadd.f32 %v1567_v27, %v1030_v25 }
 0x2e9   :  { %1579 = vst [vmem:[#allocation12 + $0x40] sm:$0xff] %v1555_v28 }
 0x2ea   :  { %1580 = vst [vmem:[#allocation12 + $0x48] sm:$0xff] %v1568_v0 }
 0x2eb   :  { %1602 = dma.vmem_to_hbm [thread:$0]  %s1598_s10, 1280, %s1600_s13, [#allocation13]  }
 0x2ee   :  { %v1556_v22 = vpop.f32.mrf.mxu0  ;;  %v1569_v24 = vpop.f32.mrf.mxu1 }
 0x2ef   :  { %2537 = dma.done.wait [#allocation5], 128  }
 0x2f0   :  { %2538 = vsyncadd [#allocation5], 4294967168 }
 0x2f1   :  { %2539 = dma.done.wait [#allocation13], 1280  }
 0x2f2   :  { %2540 = vsyncadd [#allocation13], 4294966016 }
 0x2f3   :  { %1611 = vsyncpa [#allocation4], 1 }
 0x2f4   :  { %1612 = vsyncpa [#allocation7], 1 }
 0x2f5   :  { %1613 = vsyncpa [#allocation10], 1 }
 0x2f6   :  { %1614 = vsyncpa [#allocation5], 1 }
 0x2f7   :  { %1615 = vsyncpa [#allocation13], 1 }

</bundles_post_ra>
